<compile_context>
chip_gen: v5e
topology: v5e:2x2
jax: 0.10.0
libtpu: 0.0.40
codegen_flags: <defaults>
</compile_context>

<pallas_src>
import functools
import math

import jax
import jax.numpy as jnp
from jax.experimental import pallas as pl
from jax.experimental.pallas import tpu as pltpu


_LANE = 128
_SUBLANE = 8
_NEG = -1e30  # bias for padded softmax columns -> exp() == 0


def _round_up(x, m):
    return ((x + m - 1) // m) * m


# --------------------------------------------------------------------------- #
# Kernels
# --------------------------------------------------------------------------- #
def _softmax_lanes(z):
    """Row softmax over the last dim (EUP reciprocal + one Newton step)."""
    m = jnp.max(z, axis=-1, keepdims=True)
    e = jnp.exp(z - m)
    d = jnp.sum(e, axis=-1, keepdims=True)
    r = pl.reciprocal(d, approx=True)      # EUP slot (otherwise idle)
    r = r * (2.0 - d * r)                  # one Newton-Raphson step -> ~1e-7 rel
    return e * r


def _heads_and_store(x, w_enc_ref, b_enc_ref, w_head_ref, b_head_ref, out_ref,
                     vp, rp, ep):
    # h = tanh(enc_linear(x)); dropout == identity (eval semantics).
    h = jnp.tanh(
        jnp.dot(x.astype(w_enc_ref.dtype), w_enc_ref[...],
                preferred_element_type=jnp.float32) + b_enc_ref[...])
    # TODO(synk): nn.Dropout() is stochastic in training mode; identity here.

    # Single fused head matmul: [TB, Hp] @ [Hp, Vp+Rp+2*Ep].
    logits = (jnp.dot(h.astype(w_head_ref.dtype), w_head_ref[...],
                      preferred_element_type=jnp.float32) + b_head_ref[...])
    # TODO(synk): for production V, add a second grid axis tiling the pred
    # segment (online/two-pass softmax) to bound VMEM on v7x (64 MiB).

    o0, o1, o2, o3 = 0, vp, vp + rp, vp + rp + ep   # 128-aligned segment bounds
    out_ref[:, o0:o1] = _softmax_lanes(logits[:, o0:o1])    # prob_pred
    out_ref[:, o1:o2] = _softmax_lanes(logits[:, o1:o2])    # prob_rel
    out_ref[:, o2:o3] = logits[:, o2:o3]                    # z_loc
    zs = logits[:, o3:]                                     # stable softplus
    out_ref[:, o3:] = jnp.maximum(zs, 0.0) + jnp.log1p(jnp.exp(-jnp.abs(zs)))


def encoder_kernel_onehot(idx_ref, emb_ref, w_enc_ref, b_enc_ref,
                          w_head_ref, b_head_ref, out_ref, *, vp, rp, ep):
    """Small-vocab path: E[s]+E[o]+E[t] fused as a one-hot MXU matmul."""
    tb = idx_ref.shape[0]
    vr = emb_ref.shape[0]
    cdt = emb_ref.dtype
    iota = jax.lax.broadcasted_iota(jnp.int32, (tb, vr), 1)
    counts = ((iota == idx_ref[:, 0:1]).astype(cdt)
              + (iota == idx_ref[:, 1:2]).astype(cdt)
              + (iota == idx_ref[:, 2:3]).astype(cdt))     # handles duplicates
    x = jnp.dot(counts, emb_ref[...], preferred_element_type=jnp.float32)
    _heads_and_store(x, w_enc_ref, b_enc_ref, w_head_ref, b_head_ref, out_ref,
                     vp, rp, ep)


def encoder_kernel_pregathered(x_ref, w_enc_ref, b_enc_ref,
                               w_head_ref, b_head_ref, out_ref, *, vp, rp, ep):
    """Large-vocab path: embedding gather+sum done in XLA; kernel gets x."""
    _heads_and_store(x_ref[...], w_enc_ref, b_enc_ref, w_head_ref, b_head_ref,
                     out_ref, vp, rp, ep)


# --------------------------------------------------------------------------- #
# Host-side helpers
# --------------------------------------------------------------------------- #
def _tpu_limits():
    info = None
    try:
        info = pltpu.get_tpu_info()
    except Exception:
        pass
    vmem_cap = getattr(info, "vmem_capacity_bytes", None) or (64 * 1024 * 1024)
    num_cores = 1
    for attr in ("num_cores", "cores_per_chip", "tensorcores_per_chip",
                 "num_tensorcores"):
        v = getattr(info, attr, None)
        if isinstance(v, int) and v > 1:
            num_cores = v
            break
    return int(vmem_cap), num_cores


def _pick_batch_tile(batch, max_tile, num_cores):
    """Multiple-of-8 batch tile that minimizes padded-tail waste."""
    bs = _round_up(batch, _SUBLANE)
    max_tile = _round_up(max(min(max_tile, bs), _SUBLANE), _SUBLANE)
    if bs <= max_tile:
        tb = bs
    else:
        best_tb, best_pad = max_tile, _round_up(bs, max_tile) - bs
        t = max_tile - _SUBLANE
        while t >= max(_SUBLANE, max_tile // 2):
            pad = _round_up(bs, t) - bs
            if pad < best_pad:
                best_tb, best_pad = t, pad
            t -= _SUBLANE
        tb = best_tb
    # v7x has 2 TensorCores: make sure a "parallel" grid axis has >= 2 steps.
    if num_cores > 1 and bs == tb and bs >= 2 * _SUBLANE:
        tb = _round_up(bs // 2, _SUBLANE)
    return tb


def encoder_forward(s, o, t, params, *, batch_tile=256, use_bf16=False,
                    gather_in_kernel=None):
    """s, o, t: int32 index vectors [B]. Returns (prob_pred, prob_rel, z_loc, z_scale)."""
    emb = params["word_embeddings"]                  # [V, E]
    V, E = emb.shape
    H = params["w_enc"].shape[1]
    R = params["w_rel"].shape[1]
    B = s.shape[0]

    if gather_in_kernel is None:
        # One-hot gather costs O(TB*V*E) MXU + O(TB*V) VPU: only for small V.
        gather_in_kernel = V <= 4096

    f32 = jnp.float32
    cdt = jnp.bfloat16 if use_bf16 else f32          # matmul inputs; f32 accumulate

    # Padded sizes (all lane-dense, 128-aligned).
    Vr = _round_up(V, _LANE)                         # embedding rows / one-hot lanes
    Ep = _round_up(E, _LANE)
    Hp = _round_up(H, _LANE)
    Vp = _round_up(V, _LANE)
    Rp = _round_up(R, _LANE)
    Np = Vp + Rp + 2 * Ep                            # fused head output width

    vmem_cap, num_cores = _tpu_limits()
    TB = _pick_batch_tile(B, batch_tile, num_cores)
    Bp = _round_up(_round_up(B, _SUBLANE), TB)

    def pad2(a, rows, cols, fill=0.0, dtype=f32):
        a = a.astype(f32)
        return jnp.pad(a, ((0, rows - a.shape[0]), (0, cols - a.shape[1])),
                       constant_values=fill).astype(dtype)

    w_enc_p = pad2(params["w_enc"], Ep, Hp, dtype=cdt)
    b_enc_p = pad2(params["b_enc"], 1, Hp)
    # Fuse the four heads: concat along output dim, each segment 128-padded.
    w_head = jnp.concatenate([
        pad2(params["w_pred"], Hp, Vp, dtype=cdt),
        pad2(params["w_rel"], Hp, Rp, dtype=cdt),
        pad2(params["w_loc"], Hp, Ep, dtype=cdt),
        pad2(params["w_scale"], Hp, Ep, dtype=cdt),
    ], axis=1)
    b_head = jnp.concatenate([
        pad2(params["b_pred"], 1, Vp, fill=_NEG),    # kill padded softmax columns
        pad2(params["b_rel"], 1, Rp, fill=_NEG),
        pad2(params["b_loc"], 1, Ep),
        pad2(params["b_scale"], 1, Ep),
    ], axis=1)

    if gather_in_kernel:
        emb_p = pad2(emb, Vr, Ep, dtype=cdt)
        # Pack s/o/t into ONE lane-aligned [Bp, 128] int32 block (one DMA/step).
        idx = jnp.zeros((Bp, _LANE), jnp.int32)
        idx = idx.at[:B, 0].set(s.astype(jnp.int32))
        idx = idx.at[:B, 1].set(o.astype(jnp.int32))
        idx = idx.at[:B, 2].set(t.astype(jnp.int32))
        kernel = functools.partial(encoder_kernel_onehot, vp=Vp, rp=Rp, ep=Ep)
        batched_inputs = [idx]
        batched_shapes = [(TB, _LANE)]
        weights = [emb_p, w_enc_p, b_enc_p, w_head, b_head]
        weight_shapes = [(Vr, Ep), (Ep, Hp), (1, Hp), (Hp, Np), (1, Np)]
    else:
        # Real gather (O(B*E) HBM traffic) done in XLA; kernel consumes x.
        x = (jnp.take(emb, s, axis=0) + jnp.take(emb, o, axis=0)
             + jnp.take(emb, t, axis=0)).astype(f32)
        x = jnp.pad(x, ((0, Bp - B), (0, Ep - E))).astype(cdt)
        kernel = functools.partial(encoder_kernel_pregathered, vp=Vp, rp=Rp, ep=Ep)
        batched_inputs = [x]
        batched_shapes = [(TB, Ep)]
        weights = [w_enc_p, b_enc_p, w_head, b_head]
        weight_shapes = [(Ep, Hp), (1, Hp), (Hp, Np), (1, Np)]

    # Size the scoped-VMEM limit from the actual buffers + headroom, capped per
    # generation (v7x 64 MiB, v5e/v6e 128 MiB physical).
    est = 0
    for arr, sh in zip(weights, weight_shapes):
        est += math.prod(sh) * arr.dtype.itemsize * 2       # worst case 2-buffered
    for arr, sh in zip(batched_inputs, batched_shapes):
        est += math.prod(sh) * arr.dtype.itemsize * 2
    est += TB * Np * 4 * 2                                   # output tile (x2)
    vmem_limit = int(min(int(vmem_cap * 0.85),
                         max(32 * 1024 * 1024, est + (16 << 20))))

    def run(single_buffer_weights):
        res_kw = ({"pipeline_mode": pl.Buffered(1)}
                  if single_buffer_weights else {})
        batched = lambda shape: pl.BlockSpec(shape, lambda i: (i, 0))
        resident = lambda shape: pl.BlockSpec(shape, lambda i: (0, 0), **res_kw)
        return pl.pallas_call(
            kernel,
            out_shape=jax.ShapeDtypeStruct((Bp, Np), f32),
            grid=(Bp // TB,),
            in_specs=([batched(sh) for sh in batched_shapes]
                      + [resident(sh) for sh in weight_shapes]),
            out_specs=batched((TB, Np)),
            compiler_params=pltpu.CompilerParams(
                dimension_semantics=("parallel",),   # batch tiles across TCs
                vmem_limit_bytes=vmem_limit,
            ),
        )(*batched_inputs, *weights)

    try:
        # Single-buffer the constant-index weights (halves resident VMEM).
        out = run(True)
        out = jax.block_until_ready(out)
    except Exception:
        # TODO(synk): pl.Buffered(1) unsupported on this jax build; use default
        # double-buffering for the resident weights.
        out = run(False)

    # Split the lane-dense slab back into the four heads (glue).
    prob_pred = out[:B, 0:V]
    prob_rel = out[:B, Vp:Vp + R]
    z_loc = out[:B, Vp + Rp:Vp + Rp + E]
    z_scale_vec = out[:B, Vp + Rp + Ep:Vp + Rp + Ep + E]

    # diagonalize(z_scale_vec): [B, E] -> [B, E, E] with vec on the diagonal.
    z_scale = z_scale_vec[:, :, None] * jnp.eye(E, dtype=f32)[None, :, :]
    return prob_pred, prob_rel, z_loc, z_scale


# --------------------------------------------------------------------------- #
# Params / reference
# --------------------------------------------------------------------------- #
def init_params(key, vocab_size, embedding_dim, hidden_dim, num_relations):
    """Synthetic init mirroring nn.Linear / frozen embedding shapes.
    Linear weights stored transposed ([in, out]) for x @ W layout."""
    ks = jax.random.split(key, 11)

    def linear(kw, kb, fan_in, fan_out):
        bound = 1.0 / jnp.sqrt(fan_in)
        w = jax.random.uniform(kw, (fan_in, fan_out), jnp.float32, -bound, bound)
        b = jax.random.uniform(kb, (1, fan_out), jnp.float32, -bound, bound)
        return w, b

    emb = jax.random.normal(ks[0], (vocab_size, embedding_dim), jnp.float32)
    w_enc, b_enc = linear(ks[1], ks[2], embedding_dim, hidden_dim)
    w_pred, b_pred = linear(ks[3], ks[4], hidden_dim, vocab_size)
    w_rel, b_rel = linear(ks[5], ks[6], hidden_dim, num_relations)
    w_loc, b_loc = linear(ks[7], ks[8], hidden_dim, embedding_dim)
    w_scale, b_scale = linear(ks[9], ks[10], hidden_dim, embedding_dim)
    return dict(word_embeddings=emb,
                w_enc=w_enc, b_enc=b_enc,
                w_pred=w_pred, b_pred=b_pred,
                w_rel=w_rel, b_rel=b_rel,
                w_loc=w_loc, b_loc=b_loc,
                w_scale=w_scale, b_scale=b_scale)


def reference_forward(s, o, t, params):
    emb = params["word_embeddings"]
    x = jnp.take(emb, s, 0) + jnp.take(emb, o, 0) + jnp.take(emb, t, 0)
    h = jnp.tanh(x @ params["w_enc"] + params["b_enc"])
    prob_pred = jax.nn.softmax(h @ params["w_pred"] + params["b_pred"], axis=-1)
    prob_rel = jax.nn.softmax(h @ params["w_rel"] + params["b_rel"], axis=-1)
    z_loc = h @ params["w_loc"] + params["b_loc"]
    zvec = jax.nn.softplus(h @ params["w_scale"] + params["b_scale"])
    E = emb.shape[1]
    z_scale = zvec[:, :, None] * jnp.eye(E, dtype=zvec.dtype)[None, :, :]
    return prob_pred, prob_rel, z_loc, z_scale


if __name__ == "__main__":
    # Small shapes: vocab=32, embedding_dim=16, hidden_dim=32, num_relations=4, batch=8
    VOCAB, EMB, HID, NREL, BATCH = 32, 16, 32, 4, 8

    key = jax.random.PRNGKey(0)
    k_params, k_s, k_o, k_t = jax.random.split(key, 4)
    params = init_params(k_params, VOCAB, EMB, HID, NREL)

    s = jax.random.randint(k_s, (BATCH,), 0, VOCAB, dtype=jnp.int32)
    o = jax.random.randint(k_o, (BATCH,), 0, VOCAB, dtype=jnp.int32)
    t = jax.random.randint(k_t, (BATCH,), 0, VOCAB, dtype=jnp.int32)

    refs = reference_forward(s, o, t, params)

    # Default path: fused in-kernel one-hot gather (small vocab).
    outs = jax.block_until_ready(encoder_forward(s, o, t, params))
    for a, b in zip(outs, refs):
        assert a.shape == b.shape and a.dtype == b.dtype
        assert jnp.allclose(a, b, atol=1e-5, rtol=1e-5), "mismatch (one-hot path)"

    # Pre-gathered path (auto-selected for production vocab sizes).
    outs2 = jax.block_until_ready(
        encoder_forward(s, o, t, params, gather_in_kernel=False))
    for a, b in zip(outs2, refs):
        assert jnp.allclose(a, b, atol=1e-5, rtol=1e-5), "mismatch (pre-gathered path)"

    print("KERNEL_OK")
</pallas_src>

<mosaic_0001>
module attributes {stable_mosaic.version = 11 : i64} {
  func.func @encoder_kernel_onehot(%arg0: i32, %arg1: memref<8x128xi32, #tpu.memory_space<vmem>>, %arg2: memref<128x128xf32, #tpu.memory_space<vmem>>, %arg3: memref<128x128xf32, #tpu.memory_space<vmem>>, %arg4: memref<1x128xf32, #tpu.memory_space<vmem>>, %arg5: memref<128x512xf32, #tpu.memory_space<vmem>>, %arg6: memref<1x512xf32, #tpu.memory_space<vmem>>, %arg7: memref<8x512xf32, #tpu.memory_space<vmem>>) attributes {dimension_semantics = [#tpu.dimension_semantics<parallel>], iteration_bounds = array<i64: 1>, scalar_prefetch = 0 : i64, scratch_operands = 0 : i64, tpu.core_type = #tpu.core_type<tc>, window_params = [{transform_indices = @transform_0, window_bounds = array<i64: 8, 128>}, {pipeline_mode = #tpu.pipeline_mode<synchronous>, transform_indices = @transform_1, window_bounds = array<i64: 128, 128>}, {pipeline_mode = #tpu.pipeline_mode<synchronous>, transform_indices = @transform_2, window_bounds = array<i64: 128, 128>}, {pipeline_mode = #tpu.pipeline_mode<synchronous>, transform_indices = @transform_3, window_bounds = array<i64: 1, 128>}, {pipeline_mode = #tpu.pipeline_mode<synchronous>, transform_indices = @transform_4, window_bounds = array<i64: 128, 512>}, {pipeline_mode = #tpu.pipeline_mode<synchronous>, transform_indices = @transform_5, window_bounds = array<i64: 1, 512>}, {transform_indices = @transform_6, window_bounds = array<i64: 8, 512>}]} {
    %0 = tpu.iota {dimensions = array<i32: 1>} : vector<8x128xi32>
    %c0 = arith.constant 0 : index
    %c0_0 = arith.constant 0 : index
    %1 = vector.load %arg1[%c0, %c0_0] : memref<8x128xi32, #tpu.memory_space<vmem>>, vector<8x1xi32>
    %2 = vector.broadcast %1 : vector<8x1xi32> to vector<8x128xi32>
    %3 = arith.cmpi eq, %0, %2 : vector<8x128xi32>
    %4 = arith.extui %3 : vector<8x128xi1> to vector<8x128xi32>
    %5 = arith.sitofp %4 : vector<8x128xi32> to vector<8x128xf32>
    %c0_1 = arith.constant 0 : index
    %c1 = arith.constant 1 : index
    %6 = vector.load %arg1[%c0_1, %c1] : memref<8x128xi32, #tpu.memory_space<vmem>>, vector<8x1xi32>
    %7 = vector.broadcast %6 : vector<8x1xi32> to vector<8x128xi32>
    %8 = arith.cmpi eq, %0, %7 : vector<8x128xi32>
    %9 = arith.extui %8 : vector<8x128xi1> to vector<8x128xi32>
    %10 = arith.sitofp %9 : vector<8x128xi32> to vector<8x128xf32>
    %11 = arith.addf %5, %10 : vector<8x128xf32>
    %c0_2 = arith.constant 0 : index
    %c2 = arith.constant 2 : index
    %12 = vector.load %arg1[%c0_2, %c2] : memref<8x128xi32, #tpu.memory_space<vmem>>, vector<8x1xi32>
    %13 = vector.broadcast %12 : vector<8x1xi32> to vector<8x128xi32>
    %14 = arith.cmpi eq, %0, %13 : vector<8x128xi32>
    %15 = arith.extui %14 : vector<8x128xi1> to vector<8x128xi32>
    %16 = arith.sitofp %15 : vector<8x128xi32> to vector<8x128xf32>
    %17 = arith.addf %11, %16 : vector<8x128xf32>
    %c0_3 = arith.constant 0 : index
    %c0_4 = arith.constant 0 : index
    %18 = vector.load %arg2[%c0_3, %c0_4] : memref<128x128xf32, #tpu.memory_space<vmem>>, vector<128x128xf32>
    %cst = arith.constant dense<0.000000e+00> : vector<8x128xf32>
    %19 = tpu.matmul %17, %18, %cst {dimension_numbers = #tpu.dot_dimension_numbers<[1], [0], [0], [1], [0, 0, 1, 1], [], []>} : vector<8x128xf32>, vector<128x128xf32>, vector<8x128xf32> -> vector<8x128xf32>
    %c0_5 = arith.constant 0 : index
    %c0_6 = arith.constant 0 : index
    %20 = vector.load %arg3[%c0_5, %c0_6] : memref<128x128xf32, #tpu.memory_space<vmem>>, vector<128x128xf32>
    %cst_7 = arith.constant dense<0.000000e+00> : vector<8x128xf32>
    %21 = tpu.matmul %19, %20, %cst_7 {dimension_numbers = #tpu.dot_dimension_numbers<[1], [0], [0], [1], [0, 0, 1, 1], [], []>} : vector<8x128xf32>, vector<128x128xf32>, vector<8x128xf32> -> vector<8x128xf32>
    %c0_8 = arith.constant 0 : index
    %c0_9 = arith.constant 0 : index
    %22 = vector.load %arg4[%c0_8, %c0_9] : memref<1x128xf32, #tpu.memory_space<vmem>>, vector<1x128xf32>
    %23 = vector.broadcast %22 : vector<1x128xf32> to vector<8x128xf32>
    %24 = arith.addf %21, %23 : vector<8x128xf32>
    %25 = math.tanh %24 : vector<8x128xf32>
    %c0_10 = arith.constant 0 : index
    %c0_11 = arith.constant 0 : index
    %26 = vector.load %arg5[%c0_10, %c0_11] : memref<128x512xf32, #tpu.memory_space<vmem>>, vector<128x512xf32>
    %cst_12 = arith.constant dense<0.000000e+00> : vector<8x512xf32>
    %27 = tpu.matmul %25, %26, %cst_12 {dimension_numbers = #tpu.dot_dimension_numbers<[1], [0], [0], [1], [0, 0, 1, 1], [], []>} : vector<8x128xf32>, vector<128x512xf32>, vector<8x512xf32> -> vector<8x512xf32>
    %c0_13 = arith.constant 0 : index
    %c0_14 = arith.constant 0 : index
    %28 = vector.load %arg6[%c0_13, %c0_14] : memref<1x512xf32, #tpu.memory_space<vmem>>, vector<1x512xf32>
    %29 = vector.broadcast %28 : vector<1x512xf32> to vector<8x512xf32>
    %30 = arith.addf %27, %29 : vector<8x512xf32>
    %31 = vector.extract_strided_slice %30 {offsets = [0, 0], sizes = [8, 128], strides = [1, 1]} : vector<8x512xf32> to vector<8x128xf32>
    %cst_15 = arith.constant dense<0xFF800000> : vector<8xf32>
    %32 = vector.multi_reduction <maximumf>, %31, %cst_15 [1] : vector<8x128xf32> to vector<8xf32>
    %33 = vector.shape_cast %32 : vector<8xf32> to vector<8x1xf32>
    %34 = vector.broadcast %33 : vector<8x1xf32> to vector<8x128xf32>
    %35 = arith.subf %31, %34 : vector<8x128xf32>
    %36 = math.exp %35 : vector<8x128xf32>
    %cst_16 = arith.constant dense<0.000000e+00> : vector<8xf32>
    %37 = vector.multi_reduction <add>, %36, %cst_16 [1] : vector<8x128xf32> to vector<8xf32>
    %38 = vector.shape_cast %37 : vector<8xf32> to vector<8x1xf32>
    %39 = tpu.reciprocal %38 {approx = true} : vector<8x1xf32> -> vector<8x1xf32>
    %40 = arith.mulf %38, %39 : vector<8x1xf32>
    %cst_17 = arith.constant 2.000000e+00 : f32
    %41 = vector.broadcast %cst_17 : f32 to vector<8x1xf32>
    %42 = arith.subf %41, %40 : vector<8x1xf32>
    %43 = arith.mulf %39, %42 : vector<8x1xf32>
    %44 = vector.broadcast %43 : vector<8x1xf32> to vector<8x128xf32>
    %45 = arith.mulf %36, %44 : vector<8x128xf32>
    %c0_18 = arith.constant 0 : index
    %c0_19 = arith.constant 0 : index
    %46 = vector.load %arg7[%c0_18, %c0_19] : memref<8x512xf32, #tpu.memory_space<vmem>>, vector<8x128xf32>
    tpu.vector_store %arg7[%c0_18, %c0_19], %45 {strides = array<i32>} : memref<8x512xf32, #tpu.memory_space<vmem>>, vector<8x128xf32>,
    %47 = vector.extract_strided_slice %30 {offsets = [0, 128], sizes = [8, 128], strides = [1, 1]} : vector<8x512xf32> to vector<8x128xf32>
    %cst_20 = arith.constant dense<0xFF800000> : vector<8xf32>
    %48 = vector.multi_reduction <maximumf>, %47, %cst_20 [1] : vector<8x128xf32> to vector<8xf32>
    %49 = vector.shape_cast %48 : vector<8xf32> to vector<8x1xf32>
    %50 = vector.broadcast %49 : vector<8x1xf32> to vector<8x128xf32>
    %51 = arith.subf %47, %50 : vector<8x128xf32>
    %52 = math.exp %51 : vector<8x128xf32>
    %cst_21 = arith.constant dense<0.000000e+00> : vector<8xf32>
    %53 = vector.multi_reduction <add>, %52, %cst_21 [1] : vector<8x128xf32> to vector<8xf32>
    %54 = vector.shape_cast %53 : vector<8xf32> to vector<8x1xf32>
    %55 = tpu.reciprocal %54 {approx = true} : vector<8x1xf32> -> vector<8x1xf32>
    %56 = arith.mulf %54, %55 : vector<8x1xf32>
    %cst_22 = arith.constant 2.000000e+00 : f32
    %57 = vector.broadcast %cst_22 : f32 to vector<8x1xf32>
    %58 = arith.subf %57, %56 : vector<8x1xf32>
    %59 = arith.mulf %55, %58 : vector<8x1xf32>
    %60 = vector.broadcast %59 : vector<8x1xf32> to vector<8x128xf32>
    %61 = arith.mulf %52, %60 : vector<8x128xf32>
    %c0_23 = arith.constant 0 : index
    %c128 = arith.constant 128 : index
    %62 = vector.load %arg7[%c0_23, %c128] : memref<8x512xf32, #tpu.memory_space<vmem>>, vector<8x128xf32>
    tpu.vector_store %arg7[%c0_23, %c128], %61 {strides = array<i32>} : memref<8x512xf32, #tpu.memory_space<vmem>>, vector<8x128xf32>,
    %63 = vector.extract_strided_slice %30 {offsets = [0, 256], sizes = [8, 128], strides = [1, 1]} : vector<8x512xf32> to vector<8x128xf32>
    %c0_24 = arith.constant 0 : index
    %c256 = arith.constant 256 : index
    %64 = vector.load %arg7[%c0_24, %c256] : memref<8x512xf32, #tpu.memory_space<vmem>>, vector<8x128xf32>
    tpu.vector_store %arg7[%c0_24, %c256], %63 {strides = array<i32>} : memref<8x512xf32, #tpu.memory_space<vmem>>, vector<8x128xf32>,
    %65 = vector.extract_strided_slice %30 {offsets = [0, 384], sizes = [8, 128], strides = [1, 1]} : vector<8x512xf32> to vector<8x128xf32>
    %cst_25 = arith.constant 0.000000e+00 : f32
    %66 = vector.broadcast %cst_25 : f32 to vector<8x128xf32>
    %67 = arith.maximumf %65, %66 : vector<8x128xf32>
    %68 = math.absf %65 : vector<8x128xf32>
    %cst_26 = arith.constant 0.000000e+00 : f32
    %69 = vector.broadcast %cst_26 : f32 to vector<8x128xf32>
    %70 = arith.subf %69, %68 : vector<8x128xf32>
    %71 = math.exp %70 : vector<8x128xf32>
    %72 = math.log1p %71 : vector<8x128xf32>
    %73 = arith.addf %67, %72 : vector<8x128xf32>
    %c0_27 = arith.constant 0 : index
    %c384 = arith.constant 384 : index
    %74 = vector.load %arg7[%c0_27, %c384] : memref<8x512xf32, #tpu.memory_space<vmem>>, vector<8x128xf32>
    tpu.vector_store %arg7[%c0_27, %c384], %73 {strides = array<i32>} : memref<8x512xf32, #tpu.memory_space<vmem>>, vector<8x128xf32>,
    return
  }
  func.func @transform_0(%arg0: i32) -> (i32, i32) {
    %c0_i32 = arith.constant 0 : i32
    %c0_i32_0 = arith.constant 0 : i32
    return %arg0, %c0_i32 : i32, i32
  }
  func.func @transform_1(%arg0: i32) -> (i32, i32) {
    %c0_i32 = arith.constant 0 : i32
    %c0_i32_0 = arith.constant 0 : i32
    %c0_i32_1 = arith.constant 0 : i32
    return %c0_i32, %c0_i32_0 : i32, i32
  }
  func.func @transform_2(%arg0: i32) -> (i32, i32) {
    %c0_i32 = arith.constant 0 : i32
    %c0_i32_0 = arith.constant 0 : i32
    %c0_i32_1 = arith.constant 0 : i32
    return %c0_i32, %c0_i32_0 : i32, i32
  }
  func.func @transform_3(%arg0: i32) -> (i32, i32) {
    %c0_i32 = arith.constant 0 : i32
    %c0_i32_0 = arith.constant 0 : i32
    %c0_i32_1 = arith.constant 0 : i32
    return %c0_i32, %c0_i32_0 : i32, i32
  }
  func.func @transform_4(%arg0: i32) -> (i32, i32) {
    %c0_i32 = arith.constant 0 : i32
    %c0_i32_0 = arith.constant 0 : i32
    %c0_i32_1 = arith.constant 0 : i32
    return %c0_i32, %c0_i32_0 : i32, i32
  }
  func.func @transform_5(%arg0: i32) -> (i32, i32) {
    %c0_i32 = arith.constant 0 : i32
    %c0_i32_0 = arith.constant 0 : i32
    %c0_i32_1 = arith.constant 0 : i32
    return %c0_i32, %c0_i32_0 : i32, i32
  }
  func.func @transform_6(%arg0: i32) -> (i32, i32) {
    %c0_i32 = arith.constant 0 : i32
    %c0_i32_0 = arith.constant 0 : i32
    return %arg0, %c0_i32 : i32, i32
  }
}

module attributes {stable_mosaic.version = 11 : i64} {
  func.func @encoder_kernel_onehot(%arg0: i32, %arg1: memref<8x128xi32, #tpu.memory_space<vmem>>, %arg2: memref<128x128xf32, #tpu.memory_space<vmem>>, %arg3: memref<128x128xf32, #tpu.memory_space<vmem>>, %arg4: memref<1x128xf32, #tpu.memory_space<vmem>>, %arg5: memref<128x512xf32, #tpu.memory_space<vmem>>, %arg6: memref<1x512xf32, #tpu.memory_space<vmem>>, %arg7: memref<8x512xf32, #tpu.memory_space<vmem>>) attributes {dimension_semantics = [#tpu.dimension_semantics<parallel>], iteration_bounds = array<i64: 1>, scalar_prefetch = 0 : i64, scratch_operands = 0 : i64, tpu.core_type = #tpu.core_type<tc>, window_params = [{transform_indices = @transform_0, window_bounds = array<i64: 8, 128>}, {pipeline_mode = #tpu.pipeline_mode<synchronous>, transform_indices = @transform_1, window_bounds = array<i64: 128, 128>}, {pipeline_mode = #tpu.pipeline_mode<synchronous>, transform_indices = @transform_2, window_bounds = array<i64: 128, 128>}, {pipeline_mode = #tpu.pipeline_mode<synchronous>, transform_indices = @transform_3, window_bounds = array<i64: 1, 128>}, {pipeline_mode = #tpu.pipeline_mode<synchronous>, transform_indices = @transform_4, window_bounds = array<i64: 128, 512>}, {pipeline_mode = #tpu.pipeline_mode<synchronous>, transform_indices = @transform_5, window_bounds = array<i64: 1, 512>}, {transform_indices = @transform_6, window_bounds = array<i64: 8, 512>}]} {
    %0 = tpu.iota {dimensions = array<i32: 1>} : vector<8x128xi32>
    %c0 = arith.constant 0 : index
    %c0_0 = arith.constant 0 : index
    %1 = vector.load %arg1[%c0, %c0_0] : memref<8x128xi32, #tpu.memory_space<vmem>>, vector<8x1xi32>
    %2 = vector.broadcast %1 : vector<8x1xi32> to vector<8x128xi32>
    %3 = arith.cmpi eq, %0, %2 : vector<8x128xi32>
    %4 = arith.extui %3 : vector<8x128xi1> to vector<8x128xi32>
    %5 = arith.sitofp %4 : vector<8x128xi32> to vector<8x128xf32>
    %c0_1 = arith.constant 0 : index
    %c1 = arith.constant 1 : index
    %6 = vector.load %arg1[%c0_1, %c1] : memref<8x128xi32, #tpu.memory_space<vmem>>, vector<8x1xi32>
    %7 = vector.broadcast %6 : vector<8x1xi32> to vector<8x128xi32>
    %8 = arith.cmpi eq, %0, %7 : vector<8x128xi32>
    %9 = arith.extui %8 : vector<8x128xi1> to vector<8x128xi32>
    %10 = arith.sitofp %9 : vector<8x128xi32> to vector<8x128xf32>
    %11 = arith.addf %5, %10 : vector<8x128xf32>
    %c0_2 = arith.constant 0 : index
    %c2 = arith.constant 2 : index
    %12 = vector.load %arg1[%c0_2, %c2] : memref<8x128xi32, #tpu.memory_space<vmem>>, vector<8x1xi32>
    %13 = vector.broadcast %12 : vector<8x1xi32> to vector<8x128xi32>
    %14 = arith.cmpi eq, %0, %13 : vector<8x128xi32>
    %15 = arith.extui %14 : vector<8x128xi1> to vector<8x128xi32>
    %16 = arith.sitofp %15 : vector<8x128xi32> to vector<8x128xf32>
    %17 = arith.addf %11, %16 : vector<8x128xf32>
    %c0_3 = arith.constant 0 : index
    %c0_4 = arith.constant 0 : index
    %18 = vector.load %arg2[%c0_3, %c0_4] : memref<128x128xf32, #tpu.memory_space<vmem>>, vector<128x128xf32>
    %cst = arith.constant dense<0.000000e+00> : vector<8x128xf32>
    %19 = tpu.matmul %17, %18, %cst {dimension_numbers = #tpu.dot_dimension_numbers<[1], [0], [0], [1], [0, 0, 1, 1], [], []>} : vector<8x128xf32>, vector<128x128xf32>, vector<8x128xf32> -> vector<8x128xf32>
    %c0_5 = arith.constant 0 : index
    %c0_6 = arith.constant 0 : index
    %20 = vector.load %arg3[%c0_5, %c0_6] : memref<128x128xf32, #tpu.memory_space<vmem>>, vector<128x128xf32>
    %cst_7 = arith.constant dense<0.000000e+00> : vector<8x128xf32>
    %21 = tpu.matmul %19, %20, %cst_7 {dimension_numbers = #tpu.dot_dimension_numbers<[1], [0], [0], [1], [0, 0, 1, 1], [], []>} : vector<8x128xf32>, vector<128x128xf32>, vector<8x128xf32> -> vector<8x128xf32>
    %c0_8 = arith.constant 0 : index
    %c0_9 = arith.constant 0 : index
    %22 = vector.load %arg4[%c0_8, %c0_9] : memref<1x128xf32, #tpu.memory_space<vmem>>, vector<1x128xf32>
    %23 = vector.broadcast %22 : vector<1x128xf32> to vector<8x128xf32>
    %24 = arith.addf %21, %23 : vector<8x128xf32>
    %25 = math.tanh %24 : vector<8x128xf32>
    %c0_10 = arith.constant 0 : index
    %c0_11 = arith.constant 0 : index
    %26 = vector.load %arg5[%c0_10, %c0_11] : memref<128x512xf32, #tpu.memory_space<vmem>>, vector<128x512xf32>
    %cst_12 = arith.constant dense<0.000000e+00> : vector<8x512xf32>
    %27 = tpu.matmul %25, %26, %cst_12 {dimension_numbers = #tpu.dot_dimension_numbers<[1], [0], [0], [1], [0, 0, 1, 1], [], []>} : vector<8x128xf32>, vector<128x512xf32>, vector<8x512xf32> -> vector<8x512xf32>
    %c0_13 = arith.constant 0 : index
    %c0_14 = arith.constant 0 : index
    %28 = vector.load %arg6[%c0_13, %c0_14] : memref<1x512xf32, #tpu.memory_space<vmem>>, vector<1x512xf32>
    %29 = vector.broadcast %28 : vector<1x512xf32> to vector<8x512xf32>
    %30 = arith.addf %27, %29 : vector<8x512xf32>
    %31 = vector.extract_strided_slice %30 {offsets = [0, 0], sizes = [8, 128], strides = [1, 1]} : vector<8x512xf32> to vector<8x128xf32>
    %cst_15 = arith.constant dense<0xFF800000> : vector<8xf32>
    %32 = vector.multi_reduction <maximumf>, %31, %cst_15 [1] : vector<8x128xf32> to vector<8xf32>
    %33 = vector.shape_cast %32 : vector<8xf32> to vector<8x1xf32>
    %34 = vector.broadcast %33 : vector<8x1xf32> to vector<8x128xf32>
    %35 = arith.subf %31, %34 : vector<8x128xf32>
    %36 = math.exp %35 : vector<8x128xf32>
    %cst_16 = arith.constant dense<0.000000e+00> : vector<8xf32>
    %37 = vector.multi_reduction <add>, %36, %cst_16 [1] : vector<8x128xf32> to vector<8xf32>
    %38 = vector.shape_cast %37 : vector<8xf32> to vector<8x1xf32>
    %39 = tpu.reciprocal %38 {approx = true} : vector<8x1xf32> -> vector<8x1xf32>
    %40 = arith.mulf %38, %39 : vector<8x1xf32>
    %cst_17 = arith.constant 2.000000e+00 : f32
    %41 = vector.broadcast %cst_17 : f32 to vector<8x1xf32>
    %42 = arith.subf %41, %40 : vector<8x1xf32>
    %43 = arith.mulf %39, %42 : vector<8x1xf32>
    %44 = vector.broadcast %43 : vector<8x1xf32> to vector<8x128xf32>
    %45 = arith.mulf %36, %44 : vector<8x128xf32>
    %c0_18 = arith.constant 0 : index
    %c0_19 = arith.constant 0 : index
    %46 = vector.load %arg7[%c0_18, %c0_19] : memref<8x512xf32, #tpu.memory_space<vmem>>, vector<8x128xf32>
    tpu.vector_store %arg7[%c0_18, %c0_19], %45 {strides = array<i32>} : memref<8x512xf32, #tpu.memory_space<vmem>>, vector<8x128xf32>,
    %47 = vector.extract_strided_slice %30 {offsets = [0, 128], sizes = [8, 128], strides = [1, 1]} : vector<8x512xf32> to vector<8x128xf32>
    %cst_20 = arith.constant dense<0xFF800000> : vector<8xf32>
    %48 = vector.multi_reduction <maximumf>, %47, %cst_20 [1] : vector<8x128xf32> to vector<8xf32>
    %49 = vector.shape_cast %48 : vector<8xf32> to vector<8x1xf32>
    %50 = vector.broadcast %49 : vector<8x1xf32> to vector<8x128xf32>
    %51 = arith.subf %47, %50 : vector<8x128xf32>
    %52 = math.exp %51 : vector<8x128xf32>
    %cst_21 = arith.constant dense<0.000000e+00> : vector<8xf32>
    %53 = vector.multi_reduction <add>, %52, %cst_21 [1] : vector<8x128xf32> to vector<8xf32>
    %54 = vector.shape_cast %53 : vector<8xf32> to vector<8x1xf32>
    %55 = tpu.reciprocal %54 {approx = true} : vector<8x1xf32> -> vector<8x1xf32>
    %56 = arith.mulf %54, %55 : vector<8x1xf32>
    %cst_22 = arith.constant 2.000000e+00 : f32
    %57 = vector.broadcast %cst_22 : f32 to vector<8x1xf32>
    %58 = arith.subf %57, %56 : vector<8x1xf32>
    %59 = arith.mulf %55, %58 : vector<8x1xf32>
    %60 = vector.broadcast %59 : vector<8x1xf32> to vector<8x128xf32>
    %61 = arith.mulf %52, %60 : vector<8x128xf32>
    %c0_23 = arith.constant 0 : index
    %c128 = arith.constant 128 : index
    %62 = vector.load %arg7[%c0_23, %c128] : memref<8x512xf32, #tpu.memory_space<vmem>>, vector<8x128xf32>
    tpu.vector_store %arg7[%c0_23, %c128], %61 {strides = array<i32>} : memref<8x512xf32, #tpu.memory_space<vmem>>, vector<8x128xf32>,
    %63 = vector.extract_strided_slice %30 {offsets = [0, 256], sizes = [8, 128], strides = [1, 1]} : vector<8x512xf32> to vector<8x128xf32>
    %c0_24 = arith.constant 0 : index
    %c256 = arith.constant 256 : index
    %64 = vector.load %arg7[%c0_24, %c256] : memref<8x512xf32, #tpu.memory_space<vmem>>, vector<8x128xf32>
    tpu.vector_store %arg7[%c0_24, %c256], %63 {strides = array<i32>} : memref<8x512xf32, #tpu.memory_space<vmem>>, vector<8x128xf32>,
    %65 = vector.extract_strided_slice %30 {offsets = [0, 384], sizes = [8, 128], strides = [1, 1]} : vector<8x512xf32> to vector<8x128xf32>
    %cst_25 = arith.constant 0.000000e+00 : f32
    %66 = vector.broadcast %cst_25 : f32 to vector<8x128xf32>
    %67 = arith.maximumf %65, %66 : vector<8x128xf32>
    %68 = math.absf %65 : vector<8x128xf32>
    %cst_26 = arith.constant 0.000000e+00 : f32
    %69 = vector.broadcast %cst_26 : f32 to vector<8x128xf32>
    %70 = arith.subf %69, %68 : vector<8x128xf32>
    %71 = math.exp %70 : vector<8x128xf32>
    %72 = math.log1p %71 : vector<8x128xf32>
    %73 = arith.addf %67, %72 : vector<8x128xf32>
    %c0_27 = arith.constant 0 : index
    %c384 = arith.constant 384 : index
    %74 = vector.load %arg7[%c0_27, %c384] : memref<8x512xf32, #tpu.memory_space<vmem>>, vector<8x128xf32>
    tpu.vector_store %arg7[%c0_27, %c384], %73 {strides = array<i32>} : memref<8x512xf32, #tpu.memory_space<vmem>>, vector<8x128xf32>,
    return
  }
  func.func @transform_0(%arg0: i32) -> (i32, i32) {
    %c0_i32 = arith.constant 0 : i32
    %c0_i32_0 = arith.constant 0 : i32
    return %arg0, %c0_i32 : i32, i32
  }
  func.func @transform_1(%arg0: i32) -> (i32, i32) {
    %c0_i32 = arith.constant 0 : i32
    %c0_i32_0 = arith.constant 0 : i32
    %c0_i32_1 = arith.constant 0 : i32
    return %c0_i32, %c0_i32_0 : i32, i32
  }
  func.func @transform_2(%arg0: i32) -> (i32, i32) {
    %c0_i32 = arith.constant 0 : i32
    %c0_i32_0 = arith.constant 0 : i32
    %c0_i32_1 = arith.constant 0 : i32
    return %c0_i32, %c0_i32_0 : i32, i32
  }
  func.func @transform_3(%arg0: i32) -> (i32, i32) {
    %c0_i32 = arith.constant 0 : i32
    %c0_i32_0 = arith.constant 0 : i32
    %c0_i32_1 = arith.constant 0 : i32
    return %c0_i32, %c0_i32_0 : i32, i32
  }
  func.func @transform_4(%arg0: i32) -> (i32, i32) {
    %c0_i32 = arith.constant 0 : i32
    %c0_i32_0 = arith.constant 0 : i32
    %c0_i32_1 = arith.constant 0 : i32
    return %c0_i32, %c0_i32_0 : i32, i32
  }
  func.func @transform_5(%arg0: i32) -> (i32, i32) {
    %c0_i32 = arith.constant 0 : i32
    %c0_i32_0 = arith.constant 0 : i32
    %c0_i32_1 = arith.constant 0 : i32
    return %c0_i32, %c0_i32_0 : i32, i32
  }
  func.func @transform_6(%arg0: i32) -> (i32, i32) {
    %c0_i32 = arith.constant 0 : i32
    %c0_i32_0 = arith.constant 0 : i32
    return %arg0, %c0_i32 : i32, i32
  }
}

</mosaic_0001>

<bundles_post_ra>
// kernel: tpu_custom_call.1
= control target key start
LH: loop header
LB: loop body
LE: loop exit
PB: predicated region body
PF: predicated region fallthrough
CT: control target
= control target key end

     0   :  { %11 = vsyncpa [#allocation3], 0  ;;  %s672_s0 = inlined_call_operand.hbm [shape: s32[8,128], index: 0, kind: input, shape index: {}]   ;;  %s673_s1 = inlined_call_operand.hbm [shape: f32[128,128], index: 1, kind: input, shape index: {}]   ;;  %s674_s2 = inlined_call_operand.hbm [shape: f32[128,128], index: 2, kind: input, shape index: {}]   ;;  %s675_s3 = inlined_call_operand.hbm [shape: f32[1,128], index: 3, kind: input, shape index: {}]   ;;  %s676_s4 = inlined_call_operand.hbm [shape: f32[128,512], index: 4, kind: input, shape index: {}]   ;;  %s677_s5 = inlined_call_operand.vmem [shape: f32[1,512], index: 5, kind: input, shape index: {}]   ;;  %s678_s6 = inlined_call_operand.hbm [shape: f32[8,512], index: 6, kind: output, shape index: {}]  }
   0x1   :  { %12 = vsyncpa [#allocation6], 0 }
   0x2   :  { %13 = vsyncpa [#allocation9], 0  ;;  %s30_s23 = sshll.u32 %s673_s1, 4  ;;  %s31_s23 = int_to_ptr.hbm [resolvable:$true] %s30_s23 }
   0x3   :  { %14 = vsyncpa [#allocation4], 0  ;;  %s602_s24 = smov [#allocation5]   ;;  %s57_s28 = sshll.u32 %s675_s3, 4  ;;  %s58_s28 = int_to_ptr.hbm [resolvable:$true] %s57_s28 }
   0x4   :  { %s32_s25 = sshll.u32 %s602_s24, 4  ;;  %s603_s29 = smov 128   ;;  %s33_s25 = int_to_ptr.vmem [resolvable:$true] %s32_s25 }
   0x5   :  { %s604_s30 = smov 8   ;;  %s605_s7 = smov [#allocation8]  }
   0x6   :  { %38 = dma.hbm_to_vmem [thread:$0]  %s31_s23, 2048, %s33_s25, [#allocation6], %s603_s29, %s603_s29, %s604_s30  }
   0x7   :  { %s59_s8 = sshll.u32 %s605_s7, 4  ;;  %s20_s11 = sshll.u32 %s672_s0, 4  ;;  %s60_s8 = int_to_ptr.vmem [resolvable:$true] %s59_s8  ;;  %s21_s11 = int_to_ptr.hbm [resolvable:$true] %s20_s11 }
   0x8   :  { %62 = dma.hbm_to_vmem [thread:$0]  %s58_s28, 16, %s60_s8, [#allocation9]  }
   0x9   :  { %s43_s13 = sshll.u32 %s674_s2, 4  ;;  %s606_s14 = smov [#allocation2]   ;;  %s44_s13 = int_to_ptr.hbm [resolvable:$true] %s43_s13 }
   0xa   :  { %s22_s15 = sshll.u32 %s606_s14, 4  ;;  %s607_s3 = smov [#allocation7]   ;;  %s23_s15 = int_to_ptr.vmem [resolvable:$true] %s22_s15 }
   0xb   :  { %25 = dma.hbm_to_vmem [thread:$0]  %s21_s11, 128, %s23_s15, [#allocation3]  }
   0xc   :  { %s45_s16 = sshll.u32 %s607_s3, 4  ;;  %s67_s19 = sshll.u32 %s676_s4, 4  ;;  %s46_s16 = int_to_ptr.vmem [resolvable:$true] %s45_s16  ;;  %s68_s19 = int_to_ptr.hbm [resolvable:$true] %s67_s19 }
   0xd   :  { %51 = dma.hbm_to_vmem [thread:$0]  %s44_s13, 2048, %s46_s16, [#allocation6], %s603_s29, %s603_s29, %s604_s30  }
   0xe   :  { %s608_s0 = smov [#allocation10]   ;;  %s609_s21 = smov 512  }
   0xf   :  { %s69_s20 = sshll.u32 %s608_s0, 4  ;;  %s610_s22 = smov 32   ;;  %s70_s20 = int_to_ptr.vmem [resolvable:$true] %s69_s20 }
  0x10   :  { %75 = dma.hbm_to_vmem [thread:$0]  %s68_s19, 8192, %s70_s20, [#allocation9], %s609_s21, %s609_s21, %s610_s22  }
  0x11   :  { %594 = dma.done.wait [#allocation3], 128  }
  0x12   :  { %595 = vsyncadd [#allocation3], 4294967168 }
  0x13   :  { %596 = dma.done.wait [#allocation6], 4096  }
  0x14   :  { %597 = vsyncadd [#allocation6], 4294963200 }
  0x15   :  { %598 = dma.done.wait [#allocation9], 8208  }
  0x16   :  { %599 = vsyncadd [#allocation9], 4294959088  ;;  %v611_v0 = vmov 0   ;;  %v612_v1 = vmov 2   ;;  %v100_v2 = vld [vmem:[#allocation2] sm:$0xff]  ;;  %v135_v4 = vld [vmem:[#allocation5 + $0x70] sm:$0xff]  ;;  %v98_v29 = vlaneseq }
  0x17   :  { %431 = vset.pattern.permute.xlu0 %v611_v0  ;;  %433 = vset.pattern.permute.xlu1 %v612_v1  ;;  %v136_v3 = vld [vmem:[#allocation5 + $0x78] sm:$0xff]  ;;  %v134_v5 = vld [vmem:[#allocation5 + $0x68] sm:$0xff]  ;;  %v133_v6 = vld [vmem:[#allocation5 + $0x60] sm:$0xff]  ;;  %v613_v8 = vmov 1   ;;  %v614_v40 = vmov 0.0   ;;  %s402_s26 = sshll.u32 %s678_s6, 4  ;;  %s403_s26 = int_to_ptr.hbm [resolvable:$true] %s402_s26 }
  0x18   :  { %102 = vperm.xlu0 %431, %v100_v2   ;;  %115 = vperm.xlu1 %433, %v100_v2   ;;  %v132_v7 = vld [vmem:[#allocation5 + $0x58] sm:$0xff]  ;;  %v131_v9 = vld [vmem:[#allocation5 + $0x50] sm:$0xff]  ;;  %v130_v10 = vld [vmem:[#allocation5 + $0x48] sm:$0xff]  ;;  %v99_v33 = vand.u32 127, %v98_v29 }
  0x19   :  { %137 = vmatpush.msra.mxu0 %v136_v3  ;;  %v129_v11 = vld [vmem:[#allocation5 + $0x40] sm:$0xff]  ;;  %v128_v12 = vld [vmem:[#allocation5 + $0x38] sm:$0xff]  ;;  %v127_v13 = vld [vmem:[#allocation5 + $0x30] sm:$0xff] }
  0x1a   :  { %v126_v14 = vld [vmem:[#allocation5 + $0x28] sm:$0xff]  ;;  %v125_v15 = vld [vmem:[#allocation5 + $0x20] sm:$0xff]  ;;  %v124_v16 = vld [vmem:[#allocation5 + $0x18] sm:$0xff] }
  0x1b   :  { %138 = vmatpush.msra.mxu0 %v135_v4  ;;  %v123_v17 = vld [vmem:[#allocation5 + $0x10] sm:$0xff]  ;;  %v122_v18 = vld [vmem:[#allocation5 + $0x8] sm:$0xff]  ;;  %v121_v19 = vld [vmem:[#allocation5] sm:$0xff] }
  0x1c   :  { %v172_v20 = vld [vmem:[#allocation7 + $0x78] sm:$0xff]  ;;  %v171_v21 = vld [vmem:[#allocation7 + $0x70] sm:$0xff]  ;;  %v170_v22 = vld [vmem:[#allocation7 + $0x68] sm:$0xff] }
  0x1d   :  { %139 = vmatpush.msra.mxu0 %v134_v5  ;;  %177 = vmatpush.msra.mxu1 %v172_v20  ;;  %v169_v23 = vld [vmem:[#allocation7 + $0x60] sm:$0xff]  ;;  %v168_v24 = vld [vmem:[#allocation7 + $0x58] sm:$0xff]  ;;  %v167_v25 = vld [vmem:[#allocation7 + $0x50] sm:$0xff] }
  0x1e   :  { %v166_v26 = vld [vmem:[#allocation7 + $0x48] sm:$0xff]  ;;  %v165_v27 = vld [vmem:[#allocation7 + $0x40] sm:$0xff]  ;;  %v164_v28 = vld [vmem:[#allocation7 + $0x38] sm:$0xff] }
  0x1f   :  { %140 = vmatpush.msra.mxu0 %v133_v6  ;;  %178 = vmatpush.msra.mxu1 %v171_v21  ;;  %v163_v31 = vld [vmem:[#allocation7 + $0x30] sm:$0xff]  ;;  %v162_v32 = vld [vmem:[#allocation7 + $0x28] sm:$0xff]  ;;  %v161_v34 = vld [vmem:[#allocation7 + $0x20] sm:$0xff] }
  0x20   :  { %432 = vset.pattern.permute.xlu0 %v613_v8  ;;  %v160_v36 = vld [vmem:[#allocation7 + $0x18] sm:$0xff]  ;;  %v159_v37 = vld [vmem:[#allocation7 + $0x10] sm:$0xff]  ;;  %v158_v39 = vld [vmem:[#allocation7 + $0x8] sm:$0xff] }
  0x21   :  { %108 = vperm.xlu0 %432, %v100_v2   ;;  %141 = vmatpush.msra.mxu0 %v132_v7  ;;  %v157_v46 = vld [vmem:[#allocation7] sm:$0xff]  ;;  %v259_v48 = vld [vmem:[#allocation10 + $0x1e8] sm:$0xff]  ;;  %v260_v49 = vld [vmem:[#allocation10 + $0x1f0] sm:$0xff] }
  0x22   :  { %179 = vmatpush.msra.mxu1 %v170_v22  ;;  %v258_v47 = vld [vmem:[#allocation10 + $0x1e0] sm:$0xff]  ;;  %292 = vmatpush.msra.mxu3 %v259_v48  ;;  %v261_v50 = vld [vmem:[#allocation10 + $0x1f8] sm:$0xff]  ;;  %v255_v52 = vld [vmem:[#allocation10 + $0x1c8] sm:$0xff] }
  0x23   :  { %142 = vmatpush.msra.mxu0 %v131_v9  ;;  %272 = vmatpush.msra.mxu2 %v258_v47  ;;  %v254_v51 = vld [vmem:[#allocation10 + $0x1c0] sm:$0xff]  ;;  %v256_v53 = vld [vmem:[#allocation10 + $0x1d0] sm:$0xff]  ;;  %v257_v54 = vld [vmem:[#allocation10 + $0x1d8] sm:$0xff] }
  0x24   :  { %180 = vmatpush.msra.mxu1 %v169_v23  ;;  %v250_v55 = vld [vmem:[#allocation10 + $0x1a0] sm:$0xff]  ;;  %293 = vmatpush.msra.mxu3 %v255_v52  ;;  %v251_v56 = vld [vmem:[#allocation10 + $0x1a8] sm:$0xff]  ;;  %v252_v57 = vld [vmem:[#allocation10 + $0x1b0] sm:$0xff] }
  0x25   :  { %143 = vmatpush.msra.mxu0 %v130_v10  ;;  %273 = vmatpush.msra.mxu2 %v254_v51  ;;  %v253_v58 = vld [vmem:[#allocation10 + $0x1b8] sm:$0xff]  ;;  %v246_v59 = vld [vmem:[#allocation10 + $0x180] sm:$0xff]  ;;  %v247_v60 = vld [vmem:[#allocation10 + $0x188] sm:$0xff] }
  0x26   :  { %181 = vmatpush.msra.mxu1 %v168_v24  ;;  %294 = vmatpush.msra.mxu3 %v251_v56  ;;  %v248_v61 = vld [vmem:[#allocation10 + $0x190] sm:$0xff]  ;;  %v249_v62 = vld [vmem:[#allocation10 + $0x198] sm:$0xff]  ;;  %v242_v63 = vld [vmem:[#allocation10 + $0x160] sm:$0xff] }
  0x27   :  { %144 = vmatpush.msra.mxu0 %v129_v11  ;;  %274 = vmatpush.msra.mxu2 %v250_v55  ;;  %v243_v0 = vld [vmem:[#allocation10 + $0x168] sm:$0xff]  ;;  %v245_v2 = vld [vmem:[#allocation10 + $0x178] sm:$0xff]  ;;  %v238_v3 = vld [vmem:[#allocation10 + $0x140] sm:$0xff] }
  0x28   :  { %182 = vmatpush.msra.mxu1 %v167_v25  ;;  %295 = vmatpush.msra.mxu3 %v247_v60  ;;  %v239_v4 = vld [vmem:[#allocation10 + $0x148] sm:$0xff]  ;;  %v240_v5 = vld [vmem:[#allocation10 + $0x150] sm:$0xff]  ;;  %v241_v6 = vld [vmem:[#allocation10 + $0x158] sm:$0xff] }
  0x29   :  { %434 = vset.pattern.permute.xlu0 %v612_v1  ;;  %145 = vmatpush.msra.mxu0 %v128_v12  ;;  %v244_v1 = vld [vmem:[#allocation10 + $0x170] sm:$0xff]  ;;  %v234_v7 = vld [vmem:[#allocation10 + $0x120] sm:$0xff]  ;;  %v235_v8 = vld [vmem:[#allocation10 + $0x128] sm:$0xff] }
  0x2a   :  { %183 = vmatpush.msra.mxu1 %v166_v26  ;;  %275 = vmatpush.msra.mxu2 %v246_v59  ;;  %v236_v9 = vld [vmem:[#allocation10 + $0x130] sm:$0xff]  ;;  %v237_v10 = vld [vmem:[#allocation10 + $0x138] sm:$0xff]  ;;  %v230_v11 = vld [vmem:[#allocation10 + $0x100] sm:$0xff] }
  0x2b   :  { %146 = vmatpush.msra.mxu0 %v127_v13  ;;  %296 = vmatpush.msra.mxu3 %v243_v0  ;;  %v231_v12 = vld [vmem:[#allocation10 + $0x108] sm:$0xff]  ;;  %v232_v13 = vld [vmem:[#allocation10 + $0x110] sm:$0xff]  ;;  %v225_v22 = vld [vmem:[#allocation10 + $0xd8] sm:$0xff] }
  0x2c   :  { %184 = vmatpush.msra.mxu1 %v165_v27  ;;  %276 = vmatpush.msra.mxu2 %v242_v63  ;;  %v223_v20 = vld [vmem:[#allocation10 + $0xc8] sm:$0xff]  ;;  %v224_v21 = vld [vmem:[#allocation10 + $0xd0] sm:$0xff]  ;;  %v218_v23 = vld [vmem:[#allocation10 + $0xa0] sm:$0xff] }
  0x2d   :  { %147 = vmatpush.msra.mxu0 %v126_v14  ;;  %297 = vmatpush.msra.mxu3 %v239_v4  ;;  %v233_v14 = vld [vmem:[#allocation10 + $0x118] sm:$0xff]  ;;  %v219_v24 = vld [vmem:[#allocation10 + $0xa8] sm:$0xff]  ;;  %v220_v25 = vld [vmem:[#allocation10 + $0xb0] sm:$0xff] }
  0x2e   :  { %185 = vmatpush.msra.mxu1 %v164_v28  ;;  %277 = vmatpush.msra.mxu2 %v238_v3  ;;  %v221_v26 = vld [vmem:[#allocation10 + $0xb8] sm:$0xff]  ;;  %v214_v28 = vld [vmem:[#allocation10 + $0x80] sm:$0xff]  ;;  %v215_v29 = vld [vmem:[#allocation10 + $0x88] sm:$0xff] }
  0x2f   :  { %148 = vmatpush.msra.mxu0 %v125_v15  ;;  %298 = vmatpush.msra.mxu3 %v235_v8  ;;  %v226_v15 = vld [vmem:[#allocation10 + $0xe0] sm:$0xff]  ;;  %v201_v47 = vld [vmem:[#allocation10 + $0x18] sm:$0xff] }
  0x30   :  { %186 = vmatpush.msra.mxu1 %v163_v31  ;;  %278 = vmatpush.msra.mxu2 %v234_v7  ;;  %v217_v31 = vld [vmem:[#allocation10 + $0x98] sm:$0xff] }
  0x31   :  { %149 = vmatpush.msra.mxu0 %v124_v16  ;;  %v227_v16 = vld [vmem:[#allocation10 + $0xe8] sm:$0xff]  ;;  %299 = vmatpush.msra.mxu3 %v231_v12  ;;  %v435_v48 = vld [vmem:[#allocation8] ss:$0 sm:$0xff]  ;;  %v262_v52 = vld [vmem:[%s677_s5] sm:$0xf]  ;;  %s615_s5 = smov [#allocation11]  }
  0x32   :  { %187 = vmatpush.msra.mxu1 %v162_v32  ;;  %279 = vmatpush.msra.mxu2 %v230_v11  ;;  %v210_v32 = vld [vmem:[#allocation10 + $0x60] sm:$0xff]  ;;  %v264_v59 = vperm.slane %v262_v52, 0  ;;  %v265_v60 = vperm.slane %v262_v52, 1  ;;  %s400_s23 = sshll.u32 %s615_s5, 4  ;;  %s401_s23 = int_to_ptr.vmem [resolvable:$true] %s400_s23 }
  0x33   :  { %150 = vmatpush.msra.mxu0 %v123_v17  ;;  %v228_v17 = vld [vmem:[#allocation10 + $0xf0] sm:$0xff]  ;;  %300 = vmatpush.msra.mxu3 %v227_v16 }
  0x34   :  { %188 = vmatpush.msra.mxu1 %v161_v34  ;;  %280 = vmatpush.msra.mxu2 %v226_v15  ;;  %v212_v34 = vld [vmem:[#allocation10 + $0x70] sm:$0xff] }
  0x35   :  { %151 = vmatpush.msra.mxu0 %v122_v18  ;;  %v229_v18 = vld [vmem:[#allocation10 + $0xf8] sm:$0xff]  ;;  %301 = vmatpush.msra.mxu3 %v223_v20 }
  0x36   :  { %189 = vmatpush.msra.mxu1 %v160_v36  ;;  %v206_v36 = vld [vmem:[#allocation10 + $0x40] sm:$0xff] }
  0x37   :  { %152 = vmatpush.msra.mxu0 %v121_v19  ;;  %v222_v19 = vld [vmem:[#allocation10 + $0xc0] sm:$0xff]  ;;  %302 = vmatpush.msra.mxu3 %v219_v24 }
  0x38   :  { %190 = vmatpush.msra.mxu1 %v159_v37  ;;  %281 = vmatpush.msra.mxu2 %v222_v19  ;;  %v207_v37 = vld [vmem:[#allocation10 + $0x48] sm:$0xff] }
  0x39   :  { %312 = vmatpush.msrb.mxu0 %v260_v49  ;;  %303 = vmatpush.msra.mxu3 %v215_v29 }
  0x3a   :  { %191 = vmatpush.msra.mxu1 %v158_v39  ;;  %282 = vmatpush.msra.mxu2 %v218_v23  ;;  %v209_v39 = vld [vmem:[#allocation10 + $0x58] sm:$0xff] }
  0x3b   :  { %313 = vmatpush.msrb.mxu0 %v256_v53  ;;  %v266_v53 = vperm.slane %v262_v52, 2 }
  0x3c   :  { %192 = vmatpush.msra.mxu1 %v157_v46  ;;  %283 = vmatpush.msra.mxu2 %v214_v28  ;;  %v200_v46 = vld [vmem:[#allocation10 + $0x10] sm:$0xff] }
  0x3d   :  { %314 = vmatpush.msrb.mxu0 %v252_v57 }
  0x3e   :  { %332 = vmatpush.msrb.mxu1 %v261_v50  ;;  %284 = vmatpush.msra.mxu2 %v210_v32 }
  0x3f   :  { %315 = vmatpush.msrb.mxu0 %v248_v61 }
  0x40   :  { %333 = vmatpush.msrb.mxu1 %v257_v54  ;;  %285 = vmatpush.msra.mxu2 %v206_v36  ;;  %v267_v54 = vperm.slane %v262_v52, 3 }
  0x41   :  { %316 = vmatpush.msrb.mxu0 %v244_v1 }
  0x42   :  { %334 = vmatpush.msrb.mxu1 %v253_v58 }
  0x43   :  { %317 = vmatpush.msrb.mxu0 %v240_v5 }
  0x44   :  { %335 = vmatpush.msrb.mxu1 %v249_v62 }
  0x45   :  { %318 = vmatpush.msrb.mxu0 %v236_v9 }
  0x46   :  { %336 = vmatpush.msrb.mxu1 %v245_v2 }
  0x47   :  { %319 = vmatpush.msrb.mxu0 %v232_v13 }
  0x48   :  { %337 = vmatpush.msrb.mxu1 %v241_v6 }
  0x49   :  { %320 = vmatpush.msrb.mxu0 %v228_v17 }
  0x4a   :  { %338 = vmatpush.msrb.mxu1 %v237_v10 }
  0x4b   :  { %321 = vmatpush.msrb.mxu0 %v224_v21 }
  0x4c   :  { %339 = vmatpush.msrb.mxu1 %v233_v14 }
  0x4d   :  { %322 = vmatpush.msrb.mxu0 %v220_v25 }
  0x4e   :  { %340 = vmatpush.msrb.mxu1 %v229_v18 }
  0x50   :  { %341 = vmatpush.msrb.mxu1 %v225_v22 }
  0x52   :  { %342 = vmatpush.msrb.mxu1 %v221_v26 }
  0x54   :  { %343 = vmatpush.msrb.mxu1 %v217_v31 }
  0x8a   :  { %v103_v30 = vpop.permute.xlu0 %102  ;;  %v116_v35 = vpop.permute.xlu1 %115 }
  0x8b   :  { %vm104_vm0 = vcmp.eq.s32.totalorder %v99_v33, %v103_v30  ;;  %vm117_vm1 = vcmp.eq.s32.totalorder %v99_v33, %v116_v35  ;;  %v216_v30 = vld [vmem:[#allocation10 + $0x90] sm:$0xff]  ;;  %v213_v35 = vld [vmem:[#allocation10 + $0x78] sm:$0xff] }
  0x8c   :  { %v414_v41 = vsel %vm104_vm0, 1.0, %v614_v40  ;;  %v416_v43 = vsel %vm117_vm1, 1.0, %v614_v40  ;;  %323 = vmatpush.msrb.mxu0 %v216_v30  ;;  %344 = vmatpush.msrb.mxu1 %v213_v35 }
  0x8e   :  { %324 = vmatpush.msrb.mxu0 %v212_v34  ;;  %345 = vmatpush.msrb.mxu1 %v209_v39 }
  0x93   :  { %v109_v38 = vpop.permute.xlu0 %108 }
  0x94   :  { %vm110_vm2 = vcmp.eq.s32.totalorder %v99_v33, %v109_v38  ;;  %v211_v33 = vld [vmem:[#allocation10 + $0x68] sm:$0xff]  ;;  %v208_v38 = vld [vmem:[#allocation10 + $0x50] sm:$0xff] }
  0x95   :  { %v415_v42 = vsel %vm110_vm2, 1.0, %v614_v40  ;;  %304 = vmatpush.msra.mxu3 %v211_v33  ;;  %v202_v40 = vld [vmem:[#allocation10 + $0x20] sm:$0xff]  ;;  %325 = vmatpush.msrb.mxu0 %v208_v38 }
  0x96   :  { %v113_v44 = vadd.f32 %v415_v42, %v414_v41  ;;  %v203_v41 = vld [vmem:[#allocation10 + $0x28] sm:$0xff]  ;;  %v204_v42 = vld [vmem:[#allocation10 + $0x30] sm:$0xff]  ;;  %286 = vmatpush.msra.mxu2 %v202_v40 }
  0x97   :  { %305 = vmatpush.msra.mxu3 %v207_v37  ;;  %326 = vmatpush.msrb.mxu0 %v204_v42 }
  0x98   :  { %v120_v45 = vadd.f32 %v416_v43, %v113_v44  ;;  %v205_v43 = vld [vmem:[#allocation10 + $0x38] sm:$0xff]  ;;  %v198_v44 = vld [vmem:[#allocation10] sm:$0xff] }
  0x99   :  { %306 = vmatpush.msra.mxu3 %v203_v41  ;;  %346 = vmatpush.msrb.mxu1 %v205_v43 }
  0x9a   :  { %153 = vmatmul.f32.vlgmr.msra.gmra.mxu0 %v120_v45  ;;  %v199_v45 = vld [vmem:[#allocation10 + $0x8] sm:$0xff]  ;;  %287 = vmatpush.msra.mxu2 %v198_v44 }
  0x9b   :  { %307 = vmatpush.msra.mxu3 %v199_v45  ;;  %327 = vmatpush.msrb.mxu0 %v200_v46 }
  0x9c   :  { %347 = vmatpush.msrb.mxu1 %v201_v47 }
 0x117   :  { %v154_v27 = vpop.f32.mrf.mxu0 }
 0x118   :  { %193 = vmatmul.f32.vlgmr.msra.gmra.mxu1 %v154_v27 }
 0x195   :  { %v194_v49 = vpop.f32.mrf.mxu1 }
 0x196   :  { %v195_v50 = vadd.f32 %v435_v48, %v194_v49 }
 0x198   :  { %436 = vtanh.f32 %v195_v50 }
 0x19e   :  { %v437_v51 = vpop.eup %436 }
 0x19f   :  { %288 = vmatmul.f32.vlgmr.msra.gmra.mxu2 %v437_v51  ;;  %308 = vmatmul.f32.vlgmr.msra.gmra.mxu3 %v437_v51 }
 0x1a0   :  { %328 = vmatmul.f32.vlgmr.msrb.gmra.mxu0 %v437_v51  ;;  %348 = vmatmul.f32.vlgmr.msrb.gmra.mxu1 %v437_v51 }
 0x21d   :  { %v329_v55 = vpop.f32.mrf.mxu0  ;;  %v349_v56 = vpop.f32.mrf.mxu1 }
 0x21e   :  { %v330_v57 = vadd.f32 %v329_v55, %v266_v53  ;;  %v350_v58 = vadd.f32 %v349_v56, %v267_v54 }
 0x220   :  { %378 = vst [vmem:[#allocation11 + $0x10] sm:$0xff] %v330_v57  ;;  %v380_v61 = vand.u32 2147483647, %v350_v58  ;;  %v379_v12 = vmax.f32 %v350_v58, 0.0 }
 0x222   :  { %v381_v62 = vsub.f32 0.0, %v380_v61  ;;  %v289_v63 = vpop.f32.mrf.mxu2  ;;  %v309_v0 = vpop.f32.mrf.mxu3 }
 0x223   :  { %v290_v1 = vadd.f32 %v289_v63, %v264_v59  ;;  %v310_v2 = vadd.f32 %v309_v0, %v265_v60 }
 0x224   :  { %v382_v3 = vmul.f32 1.442695, %v381_v62 }
 0x225   :  { %365 = vmax.xlane.f32.xlu2 %v310_v2  ;;  %352 = vmax.xlane.f32.xlu1 %v290_v1 }
 0x226   :  { %438 = vpow2.f32 %v382_v3 }
 0x22c   :  { %v439_v4 = vpop.eup %438 }
 0x22d   :  { %v384_v5 = vadd.f32 1.0, %v439_v4  ;;  %v387_v6 = vmul.f32 -0.5, %v439_v4  ;;  %v390_v8 = vand.u32 2147483647, %v439_v4 }
 0x22f   :  { %440 = vlog2.f32 %v384_v5  ;;  %v388_v7 = vadd.f32 1.0, %v387_v6  ;;  %vm391_vm3 = vcmp.lt.f32.partialorder %v390_v8, 0.0004427343 }
 0x231   :  { %v389_v11 = vmul.f32 %v439_v4, %v388_v7 }
 0x235   :  { %v441_v9 = vpop.eup %440 }
 0x236   :  { %v386_v10 = vmul.f32 0.6931472, %v441_v9 }
 0x238   :  { %v392_v13 = vsel %vm391_vm3, %v389_v11, %v386_v10 }
 0x239   :  { %v393_v14 = vadd.f32 %v392_v13, %v379_v12 }
 0x23b   :  { %394 = vst [vmem:[#allocation11 + $0x18] sm:$0xff] %v393_v14 }
 0x298   :  { %v353_v15 = vpop.xlane.xlu1 %352  ;;  %v366_v17 = vpop.xlane.xlu2 %365 }
 0x299   :  { %v354_v16 = vsub.f32 %v290_v1, %v353_v15  ;;  %v367_v19 = vsub.f32 %v310_v2, %v366_v17 }
 0x29b   :  { %v355_v18 = vmul.f32 1.442695, %v354_v16  ;;  %v368_v20 = vmul.f32 1.442695, %v367_v19 }
 0x29d   :  { %442 = vpow2.f32 %v355_v18 }
 0x29e   :  { %444 = vpow2.f32 %v368_v20 }
 0x2a3   :  { %v443_v21 = vpop.eup %442 }
 0x2a4   :  { %357 = vadd.xlane.f32.xlu2 %v443_v21  ;;  %v445_v22 = vpop.eup %444 }
 0x2ac   :  { %370 = vadd.xlane.f32.xlu2 %v445_v22 }
 0x317   :  { %v358_v23 = vpop.xlane.xlu2 %357 }
 0x318   :  { %446 = vrcp.f32 %v358_v23 }
 0x31e   :  { %v447_v24 = vpop.eup %446 }
 0x31f   :  { %v360_v25 = vmul.f32 %v447_v24, %v358_v23  ;;  %v371_v26 = vpop.xlane.xlu2 %370 }
 0x320   :  { %448 = vrcp.f32 %v371_v26 }
 0x321   :  { %v361_v27 = vsub.f32 2.0, %v360_v25 }
 0x323   :  { %v362_v28 = vmul.f32 %v447_v24, %v361_v27 }
 0x325   :  { %v363_v29 = vmul.f32 %v443_v21, %v362_v28 }
 0x326   :  { %v449_v30 = vpop.eup %448 }
 0x327   :  { %364 = vst [vmem:[#allocation11] sm:$0xff] %v363_v29  ;;  %v373_v31 = vmul.f32 %v449_v30, %v371_v26 }
 0x329   :  { %v374_v32 = vsub.f32 2.0, %v373_v31 }
 0x32b   :  { %v375_v33 = vmul.f32 %v449_v30, %v374_v32 }
 0x32d   :  { %v376_v34 = vmul.f32 %v445_v22, %v375_v33 }
 0x32f   :  { %377 = vst [vmem:[#allocation11 + $0x8] sm:$0xff] %v376_v34 }
 0x330   :  { %405 = dma.vmem_to_hbm [thread:$0]  %s401_s23, 512, %s403_s26, [#allocation4]  }
 0x331   :  { %600 = dma.done.wait [#allocation4], 512  }
 0x332   :  { %601 = vsyncadd [#allocation4], 4294966784 }
 0x333   :  { %410 = vsyncpa [#allocation3], 1 }
 0x334   :  { %411 = vsyncpa [#allocation6], 1 }
 0x335   :  { %412 = vsyncpa [#allocation9], 1 }
 0x336   :  { %413 = vsyncpa [#allocation4], 1 }

// kernel: tpu_custom_call.1
= control target key start
LH: loop header
LB: loop body
LE: loop exit
PB: predicated region body
PF: predicated region fallthrough
CT: control target
= control target key end

     0   :  { %11 = vsyncpa [#allocation3], 0  ;;  %s672_s0 = inlined_call_operand.hbm [shape: s32[8,128], index: 0, kind: input, shape index: {}]   ;;  %s673_s1 = inlined_call_operand.hbm [shape: f32[128,128], index: 1, kind: input, shape index: {}]   ;;  %s674_s2 = inlined_call_operand.hbm [shape: f32[128,128], index: 2, kind: input, shape index: {}]   ;;  %s675_s3 = inlined_call_operand.hbm [shape: f32[1,128], index: 3, kind: input, shape index: {}]   ;;  %s676_s4 = inlined_call_operand.hbm [shape: f32[128,512], index: 4, kind: input, shape index: {}]   ;;  %s677_s5 = inlined_call_operand.vmem [shape: f32[1,512], index: 5, kind: input, shape index: {}]   ;;  %s678_s6 = inlined_call_operand.hbm [shape: f32[8,512], index: 6, kind: output, shape index: {}]  }
   0x1   :  { %12 = vsyncpa [#allocation6], 0 }
   0x2   :  { %13 = vsyncpa [#allocation9], 0  ;;  %s30_s23 = sshll.u32 %s673_s1, 4  ;;  %s31_s23 = int_to_ptr.hbm [resolvable:$true] %s30_s23 }
   0x3   :  { %14 = vsyncpa [#allocation4], 0  ;;  %s602_s24 = smov [#allocation5]   ;;  %s57_s28 = sshll.u32 %s675_s3, 4  ;;  %s58_s28 = int_to_ptr.hbm [resolvable:$true] %s57_s28 }
   0x4   :  { %s32_s25 = sshll.u32 %s602_s24, 4  ;;  %s603_s29 = smov 128   ;;  %s33_s25 = int_to_ptr.vmem [resolvable:$true] %s32_s25 }
   0x5   :  { %s604_s30 = smov 8   ;;  %s605_s7 = smov [#allocation8]  }
   0x6   :  { %38 = dma.hbm_to_vmem [thread:$0]  %s31_s23, 2048, %s33_s25, [#allocation6], %s603_s29, %s603_s29, %s604_s30  }
   0x7   :  { %s59_s8 = sshll.u32 %s605_s7, 4  ;;  %s20_s11 = sshll.u32 %s672_s0, 4  ;;  %s60_s8 = int_to_ptr.vmem [resolvable:$true] %s59_s8  ;;  %s21_s11 = int_to_ptr.hbm [resolvable:$true] %s20_s11 }
   0x8   :  { %62 = dma.hbm_to_vmem [thread:$0]  %s58_s28, 16, %s60_s8, [#allocation9]  }
   0x9   :  { %s43_s13 = sshll.u32 %s674_s2, 4  ;;  %s606_s14 = smov [#allocation2]   ;;  %s44_s13 = int_to_ptr.hbm [resolvable:$true] %s43_s13 }
   0xa   :  { %s22_s15 = sshll.u32 %s606_s14, 4  ;;  %s607_s3 = smov [#allocation7]   ;;  %s23_s15 = int_to_ptr.vmem [resolvable:$true] %s22_s15 }
   0xb   :  { %25 = dma.hbm_to_vmem [thread:$0]  %s21_s11, 128, %s23_s15, [#allocation3]  }
   0xc   :  { %s45_s16 = sshll.u32 %s607_s3, 4  ;;  %s67_s19 = sshll.u32 %s676_s4, 4  ;;  %s46_s16 = int_to_ptr.vmem [resolvable:$true] %s45_s16  ;;  %s68_s19 = int_to_ptr.hbm [resolvable:$true] %s67_s19 }
   0xd   :  { %51 = dma.hbm_to_vmem [thread:$0]  %s44_s13, 2048, %s46_s16, [#allocation6], %s603_s29, %s603_s29, %s604_s30  }
   0xe   :  { %s608_s0 = smov [#allocation10]   ;;  %s609_s21 = smov 512  }
   0xf   :  { %s69_s20 = sshll.u32 %s608_s0, 4  ;;  %s610_s22 = smov 32   ;;  %s70_s20 = int_to_ptr.vmem [resolvable:$true] %s69_s20 }
  0x10   :  { %75 = dma.hbm_to_vmem [thread:$0]  %s68_s19, 8192, %s70_s20, [#allocation9], %s609_s21, %s609_s21, %s610_s22  }
  0x11   :  { %594 = dma.done.wait [#allocation3], 128  }
  0x12   :  { %595 = vsyncadd [#allocation3], 4294967168 }
  0x13   :  { %596 = dma.done.wait [#allocation6], 4096  }
  0x14   :  { %597 = vsyncadd [#allocation6], 4294963200 }
  0x15   :  { %598 = dma.done.wait [#allocation9], 8208  }
  0x16   :  { %599 = vsyncadd [#allocation9], 4294959088  ;;  %v611_v0 = vmov 0   ;;  %v612_v1 = vmov 2   ;;  %v100_v2 = vld [vmem:[#allocation2] sm:$0xff]  ;;  %v135_v4 = vld [vmem:[#allocation5 + $0x70] sm:$0xff]  ;;  %v98_v29 = vlaneseq }
  0x17   :  { %431 = vset.pattern.permute.xlu0 %v611_v0  ;;  %433 = vset.pattern.permute.xlu1 %v612_v1  ;;  %v136_v3 = vld [vmem:[#allocation5 + $0x78] sm:$0xff]  ;;  %v134_v5 = vld [vmem:[#allocation5 + $0x68] sm:$0xff]  ;;  %v133_v6 = vld [vmem:[#allocation5 + $0x60] sm:$0xff]  ;;  %v613_v8 = vmov 1   ;;  %v614_v40 = vmov 0.0   ;;  %s402_s26 = sshll.u32 %s678_s6, 4  ;;  %s403_s26 = int_to_ptr.hbm [resolvable:$true] %s402_s26 }
  0x18   :  { %102 = vperm.xlu0 %431, %v100_v2   ;;  %115 = vperm.xlu1 %433, %v100_v2   ;;  %v132_v7 = vld [vmem:[#allocation5 + $0x58] sm:$0xff]  ;;  %v131_v9 = vld [vmem:[#allocation5 + $0x50] sm:$0xff]  ;;  %v130_v10 = vld [vmem:[#allocation5 + $0x48] sm:$0xff]  ;;  %v99_v33 = vand.u32 127, %v98_v29 }
  0x19   :  { %137 = vmatpush.msra.mxu0 %v136_v3  ;;  %v129_v11 = vld [vmem:[#allocation5 + $0x40] sm:$0xff]  ;;  %v128_v12 = vld [vmem:[#allocation5 + $0x38] sm:$0xff]  ;;  %v127_v13 = vld [vmem:[#allocation5 + $0x30] sm:$0xff] }
  0x1a   :  { %v126_v14 = vld [vmem:[#allocation5 + $0x28] sm:$0xff]  ;;  %v125_v15 = vld [vmem:[#allocation5 + $0x20] sm:$0xff]  ;;  %v124_v16 = vld [vmem:[#allocation5 + $0x18] sm:$0xff] }
  0x1b   :  { %138 = vmatpush.msra.mxu0 %v135_v4  ;;  %v123_v17 = vld [vmem:[#allocation5 + $0x10] sm:$0xff]  ;;  %v122_v18 = vld [vmem:[#allocation5 + $0x8] sm:$0xff]  ;;  %v121_v19 = vld [vmem:[#allocation5] sm:$0xff] }
  0x1c   :  { %v172_v20 = vld [vmem:[#allocation7 + $0x78] sm:$0xff]  ;;  %v171_v21 = vld [vmem:[#allocation7 + $0x70] sm:$0xff]  ;;  %v170_v22 = vld [vmem:[#allocation7 + $0x68] sm:$0xff] }
  0x1d   :  { %139 = vmatpush.msra.mxu0 %v134_v5  ;;  %177 = vmatpush.msra.mxu1 %v172_v20  ;;  %v169_v23 = vld [vmem:[#allocation7 + $0x60] sm:$0xff]  ;;  %v168_v24 = vld [vmem:[#allocation7 + $0x58] sm:$0xff]  ;;  %v167_v25 = vld [vmem:[#allocation7 + $0x50] sm:$0xff] }
  0x1e   :  { %v166_v26 = vld [vmem:[#allocation7 + $0x48] sm:$0xff]  ;;  %v165_v27 = vld [vmem:[#allocation7 + $0x40] sm:$0xff]  ;;  %v164_v28 = vld [vmem:[#allocation7 + $0x38] sm:$0xff] }
  0x1f   :  { %140 = vmatpush.msra.mxu0 %v133_v6  ;;  %178 = vmatpush.msra.mxu1 %v171_v21  ;;  %v163_v31 = vld [vmem:[#allocation7 + $0x30] sm:$0xff]  ;;  %v162_v32 = vld [vmem:[#allocation7 + $0x28] sm:$0xff]  ;;  %v161_v34 = vld [vmem:[#allocation7 + $0x20] sm:$0xff] }
  0x20   :  { %432 = vset.pattern.permute.xlu0 %v613_v8  ;;  %v160_v36 = vld [vmem:[#allocation7 + $0x18] sm:$0xff]  ;;  %v159_v37 = vld [vmem:[#allocation7 + $0x10] sm:$0xff]  ;;  %v158_v39 = vld [vmem:[#allocation7 + $0x8] sm:$0xff] }
  0x21   :  { %108 = vperm.xlu0 %432, %v100_v2   ;;  %141 = vmatpush.msra.mxu0 %v132_v7  ;;  %v157_v46 = vld [vmem:[#allocation7] sm:$0xff]  ;;  %v259_v48 = vld [vmem:[#allocation10 + $0x1e8] sm:$0xff]  ;;  %v260_v49 = vld [vmem:[#allocation10 + $0x1f0] sm:$0xff] }
  0x22   :  { %179 = vmatpush.msra.mxu1 %v170_v22  ;;  %v258_v47 = vld [vmem:[#allocation10 + $0x1e0] sm:$0xff]  ;;  %292 = vmatpush.msra.mxu3 %v259_v48  ;;  %v261_v50 = vld [vmem:[#allocation10 + $0x1f8] sm:$0xff]  ;;  %v255_v52 = vld [vmem:[#allocation10 + $0x1c8] sm:$0xff] }
  0x23   :  { %142 = vmatpush.msra.mxu0 %v131_v9  ;;  %272 = vmatpush.msra.mxu2 %v258_v47  ;;  %v254_v51 = vld [vmem:[#allocation10 + $0x1c0] sm:$0xff]  ;;  %v256_v53 = vld [vmem:[#allocation10 + $0x1d0] sm:$0xff]  ;;  %v257_v54 = vld [vmem:[#allocation10 + $0x1d8] sm:$0xff] }
  0x24   :  { %180 = vmatpush.msra.mxu1 %v169_v23  ;;  %v250_v55 = vld [vmem:[#allocation10 + $0x1a0] sm:$0xff]  ;;  %293 = vmatpush.msra.mxu3 %v255_v52  ;;  %v251_v56 = vld [vmem:[#allocation10 + $0x1a8] sm:$0xff]  ;;  %v252_v57 = vld [vmem:[#allocation10 + $0x1b0] sm:$0xff] }
  0x25   :  { %143 = vmatpush.msra.mxu0 %v130_v10  ;;  %273 = vmatpush.msra.mxu2 %v254_v51  ;;  %v253_v58 = vld [vmem:[#allocation10 + $0x1b8] sm:$0xff]  ;;  %v246_v59 = vld [vmem:[#allocation10 + $0x180] sm:$0xff]  ;;  %v247_v60 = vld [vmem:[#allocation10 + $0x188] sm:$0xff] }
  0x26   :  { %181 = vmatpush.msra.mxu1 %v168_v24  ;;  %294 = vmatpush.msra.mxu3 %v251_v56  ;;  %v248_v61 = vld [vmem:[#allocation10 + $0x190] sm:$0xff]  ;;  %v249_v62 = vld [vmem:[#allocation10 + $0x198] sm:$0xff]  ;;  %v242_v63 = vld [vmem:[#allocation10 + $0x160] sm:$0xff] }
  0x27   :  { %144 = vmatpush.msra.mxu0 %v129_v11  ;;  %274 = vmatpush.msra.mxu2 %v250_v55  ;;  %v243_v0 = vld [vmem:[#allocation10 + $0x168] sm:$0xff]  ;;  %v245_v2 = vld [vmem:[#allocation10 + $0x178] sm:$0xff]  ;;  %v238_v3 = vld [vmem:[#allocation10 + $0x140] sm:$0xff] }
  0x28   :  { %182 = vmatpush.msra.mxu1 %v167_v25  ;;  %295 = vmatpush.msra.mxu3 %v247_v60  ;;  %v239_v4 = vld [vmem:[#allocation10 + $0x148] sm:$0xff]  ;;  %v240_v5 = vld [vmem:[#allocation10 + $0x150] sm:$0xff]  ;;  %v241_v6 = vld [vmem:[#allocation10 + $0x158] sm:$0xff] }
  0x29   :  { %434 = vset.pattern.permute.xlu0 %v612_v1  ;;  %145 = vmatpush.msra.mxu0 %v128_v12  ;;  %v244_v1 = vld [vmem:[#allocation10 + $0x170] sm:$0xff]  ;;  %v234_v7 = vld [vmem:[#allocation10 + $0x120] sm:$0xff]  ;;  %v235_v8 = vld [vmem:[#allocation10 + $0x128] sm:$0xff] }
  0x2a   :  { %183 = vmatpush.msra.mxu1 %v166_v26  ;;  %275 = vmatpush.msra.mxu2 %v246_v59  ;;  %v236_v9 = vld [vmem:[#allocation10 + $0x130] sm:$0xff]  ;;  %v237_v10 = vld [vmem:[#allocation10 + $0x138] sm:$0xff]  ;;  %v230_v11 = vld [vmem:[#allocation10 + $0x100] sm:$0xff] }
  0x2b   :  { %146 = vmatpush.msra.mxu0 %v127_v13  ;;  %296 = vmatpush.msra.mxu3 %v243_v0  ;;  %v231_v12 = vld [vmem:[#allocation10 + $0x108] sm:$0xff]  ;;  %v232_v13 = vld [vmem:[#allocation10 + $0x110] sm:$0xff]  ;;  %v225_v22 = vld [vmem:[#allocation10 + $0xd8] sm:$0xff] }
  0x2c   :  { %184 = vmatpush.msra.mxu1 %v165_v27  ;;  %276 = vmatpush.msra.mxu2 %v242_v63  ;;  %v223_v20 = vld [vmem:[#allocation10 + $0xc8] sm:$0xff]  ;;  %v224_v21 = vld [vmem:[#allocation10 + $0xd0] sm:$0xff]  ;;  %v218_v23 = vld [vmem:[#allocation10 + $0xa0] sm:$0xff] }
  0x2d   :  { %147 = vmatpush.msra.mxu0 %v126_v14  ;;  %297 = vmatpush.msra.mxu3 %v239_v4  ;;  %v233_v14 = vld [vmem:[#allocation10 + $0x118] sm:$0xff]  ;;  %v219_v24 = vld [vmem:[#allocation10 + $0xa8] sm:$0xff]  ;;  %v220_v25 = vld [vmem:[#allocation10 + $0xb0] sm:$0xff] }
  0x2e   :  { %185 = vmatpush.msra.mxu1 %v164_v28  ;;  %277 = vmatpush.msra.mxu2 %v238_v3  ;;  %v221_v26 = vld [vmem:[#allocation10 + $0xb8] sm:$0xff]  ;;  %v214_v28 = vld [vmem:[#allocation10 + $0x80] sm:$0xff]  ;;  %v215_v29 = vld [vmem:[#allocation10 + $0x88] sm:$0xff] }
  0x2f   :  { %148 = vmatpush.msra.mxu0 %v125_v15  ;;  %298 = vmatpush.msra.mxu3 %v235_v8  ;;  %v226_v15 = vld [vmem:[#allocation10 + $0xe0] sm:$0xff]  ;;  %v201_v47 = vld [vmem:[#allocation10 + $0x18] sm:$0xff] }
  0x30   :  { %186 = vmatpush.msra.mxu1 %v163_v31  ;;  %278 = vmatpush.msra.mxu2 %v234_v7  ;;  %v217_v31 = vld [vmem:[#allocation10 + $0x98] sm:$0xff] }
  0x31   :  { %149 = vmatpush.msra.mxu0 %v124_v16  ;;  %v227_v16 = vld [vmem:[#allocation10 + $0xe8] sm:$0xff]  ;;  %299 = vmatpush.msra.mxu3 %v231_v12  ;;  %v435_v48 = vld [vmem:[#allocation8] ss:$0 sm:$0xff]  ;;  %v262_v52 = vld [vmem:[%s677_s5] sm:$0xf]  ;;  %s615_s5 = smov [#allocation11]  }
  0x32   :  { %187 = vmatpush.msra.mxu1 %v162_v32  ;;  %279 = vmatpush.msra.mxu2 %v230_v11  ;;  %v210_v32 = vld [vmem:[#allocation10 + $0x60] sm:$0xff]  ;;  %v264_v59 = vperm.slane %v262_v52, 0  ;;  %v265_v60 = vperm.slane %v262_v52, 1  ;;  %s400_s23 = sshll.u32 %s615_s5, 4  ;;  %s401_s23 = int_to_ptr.vmem [resolvable:$true] %s400_s23 }
  0x33   :  { %150 = vmatpush.msra.mxu0 %v123_v17  ;;  %v228_v17 = vld [vmem:[#allocation10 + $0xf0] sm:$0xff]  ;;  %300 = vmatpush.msra.mxu3 %v227_v16 }
  0x34   :  { %188 = vmatpush.msra.mxu1 %v161_v34  ;;  %280 = vmatpush.msra.mxu2 %v226_v15  ;;  %v212_v34 = vld [vmem:[#allocation10 + $0x70] sm:$0xff] }
  0x35   :  { %151 = vmatpush.msra.mxu0 %v122_v18  ;;  %v229_v18 = vld [vmem:[#allocation10 + $0xf8] sm:$0xff]  ;;  %301 = vmatpush.msra.mxu3 %v223_v20 }
  0x36   :  { %189 = vmatpush.msra.mxu1 %v160_v36  ;;  %v206_v36 = vld [vmem:[#allocation10 + $0x40] sm:$0xff] }
  0x37   :  { %152 = vmatpush.msra.mxu0 %v121_v19  ;;  %v222_v19 = vld [vmem:[#allocation10 + $0xc0] sm:$0xff]  ;;  %302 = vmatpush.msra.mxu3 %v219_v24 }
  0x38   :  { %190 = vmatpush.msra.mxu1 %v159_v37  ;;  %281 = vmatpush.msra.mxu2 %v222_v19  ;;  %v207_v37 = vld [vmem:[#allocation10 + $0x48] sm:$0xff] }
  0x39   :  { %312 = vmatpush.msrb.mxu0 %v260_v49  ;;  %303 = vmatpush.msra.mxu3 %v215_v29 }
  0x3a   :  { %191 = vmatpush.msra.mxu1 %v158_v39  ;;  %282 = vmatpush.msra.mxu2 %v218_v23  ;;  %v209_v39 = vld [vmem:[#allocation10 + $0x58] sm:$0xff] }
  0x3b   :  { %313 = vmatpush.msrb.mxu0 %v256_v53  ;;  %v266_v53 = vperm.slane %v262_v52, 2 }
  0x3c   :  { %192 = vmatpush.msra.mxu1 %v157_v46  ;;  %283 = vmatpush.msra.mxu2 %v214_v28  ;;  %v200_v46 = vld [vmem:[#allocation10 + $0x10] sm:$0xff] }
  0x3d   :  { %314 = vmatpush.msrb.mxu0 %v252_v57 }
  0x3e   :  { %332 = vmatpush.msrb.mxu1 %v261_v50  ;;  %284 = vmatpush.msra.mxu2 %v210_v32 }
  0x3f   :  { %315 = vmatpush.msrb.mxu0 %v248_v61 }
  0x40   :  { %333 = vmatpush.msrb.mxu1 %v257_v54  ;;  %285 = vmatpush.msra.mxu2 %v206_v36  ;;  %v267_v54 = vperm.slane %v262_v52, 3 }
  0x41   :  { %316 = vmatpush.msrb.mxu0 %v244_v1 }
  0x42   :  { %334 = vmatpush.msrb.mxu1 %v253_v58 }
  0x43   :  { %317 = vmatpush.msrb.mxu0 %v240_v5 }
  0x44   :  { %335 = vmatpush.msrb.mxu1 %v249_v62 }
  0x45   :  { %318 = vmatpush.msrb.mxu0 %v236_v9 }
  0x46   :  { %336 = vmatpush.msrb.mxu1 %v245_v2 }
  0x47   :  { %319 = vmatpush.msrb.mxu0 %v232_v13 }
  0x48   :  { %337 = vmatpush.msrb.mxu1 %v241_v6 }
  0x49   :  { %320 = vmatpush.msrb.mxu0 %v228_v17 }
  0x4a   :  { %338 = vmatpush.msrb.mxu1 %v237_v10 }
  0x4b   :  { %321 = vmatpush.msrb.mxu0 %v224_v21 }
  0x4c   :  { %339 = vmatpush.msrb.mxu1 %v233_v14 }
  0x4d   :  { %322 = vmatpush.msrb.mxu0 %v220_v25 }
  0x4e   :  { %340 = vmatpush.msrb.mxu1 %v229_v18 }
  0x50   :  { %341 = vmatpush.msrb.mxu1 %v225_v22 }
  0x52   :  { %342 = vmatpush.msrb.mxu1 %v221_v26 }
  0x54   :  { %343 = vmatpush.msrb.mxu1 %v217_v31 }
  0x8a   :  { %v103_v30 = vpop.permute.xlu0 %102  ;;  %v116_v35 = vpop.permute.xlu1 %115 }
  0x8b   :  { %vm104_vm0 = vcmp.eq.s32.totalorder %v99_v33, %v103_v30  ;;  %vm117_vm1 = vcmp.eq.s32.totalorder %v99_v33, %v116_v35  ;;  %v216_v30 = vld [vmem:[#allocation10 + $0x90] sm:$0xff]  ;;  %v213_v35 = vld [vmem:[#allocation10 + $0x78] sm:$0xff] }
  0x8c   :  { %v414_v41 = vsel %vm104_vm0, 1.0, %v614_v40  ;;  %v416_v43 = vsel %vm117_vm1, 1.0, %v614_v40  ;;  %323 = vmatpush.msrb.mxu0 %v216_v30  ;;  %344 = vmatpush.msrb.mxu1 %v213_v35 }
  0x8e   :  { %324 = vmatpush.msrb.mxu0 %v212_v34  ;;  %345 = vmatpush.msrb.mxu1 %v209_v39 }
  0x93   :  { %v109_v38 = vpop.permute.xlu0 %108 }
  0x94   :  { %vm110_vm2 = vcmp.eq.s32.totalorder %v99_v33, %v109_v38  ;;  %v211_v33 = vld [vmem:[#allocation10 + $0x68] sm:$0xff]  ;;  %v208_v38 = vld [vmem:[#allocation10 + $0x50] sm:$0xff] }
  0x95   :  { %v415_v42 = vsel %vm110_vm2, 1.0, %v614_v40  ;;  %304 = vmatpush.msra.mxu3 %v211_v33  ;;  %v202_v40 = vld [vmem:[#allocation10 + $0x20] sm:$0xff]  ;;  %325 = vmatpush.msrb.mxu0 %v208_v38 }
  0x96   :  { %v113_v44 = vadd.f32 %v415_v42, %v414_v41  ;;  %v203_v41 = vld [vmem:[#allocation10 + $0x28] sm:$0xff]  ;;  %v204_v42 = vld [vmem:[#allocation10 + $0x30] sm:$0xff]  ;;  %286 = vmatpush.msra.mxu2 %v202_v40 }
  0x97   :  { %305 = vmatpush.msra.mxu3 %v207_v37  ;;  %326 = vmatpush.msrb.mxu0 %v204_v42 }
  0x98   :  { %v120_v45 = vadd.f32 %v416_v43, %v113_v44  ;;  %v205_v43 = vld [vmem:[#allocation10 + $0x38] sm:$0xff]  ;;  %v198_v44 = vld [vmem:[#allocation10] sm:$0xff] }
  0x99   :  { %306 = vmatpush.msra.mxu3 %v203_v41  ;;  %346 = vmatpush.msrb.mxu1 %v205_v43 }
  0x9a   :  { %153 = vmatmul.f32.vlgmr.msra.gmra.mxu0 %v120_v45  ;;  %v199_v45 = vld [vmem:[#allocation10 + $0x8] sm:$0xff]  ;;  %287 = vmatpush.msra.mxu2 %v198_v44 }
  0x9b   :  { %307 = vmatpush.msra.mxu3 %v199_v45  ;;  %327 = vmatpush.msrb.mxu0 %v200_v46 }
  0x9c   :  { %347 = vmatpush.msrb.mxu1 %v201_v47 }
 0x117   :  { %v154_v27 = vpop.f32.mrf.mxu0 }
 0x118   :  { %193 = vmatmul.f32.vlgmr.msra.gmra.mxu1 %v154_v27 }
 0x195   :  { %v194_v49 = vpop.f32.mrf.mxu1 }
 0x196   :  { %v195_v50 = vadd.f32 %v435_v48, %v194_v49 }
 0x198   :  { %436 = vtanh.f32 %v195_v50 }
 0x19e   :  { %v437_v51 = vpop.eup %436 }
 0x19f   :  { %288 = vmatmul.f32.vlgmr.msra.gmra.mxu2 %v437_v51  ;;  %308 = vmatmul.f32.vlgmr.msra.gmra.mxu3 %v437_v51 }
 0x1a0   :  { %328 = vmatmul.f32.vlgmr.msrb.gmra.mxu0 %v437_v51  ;;  %348 = vmatmul.f32.vlgmr.msrb.gmra.mxu1 %v437_v51 }
 0x21d   :  { %v329_v55 = vpop.f32.mrf.mxu0  ;;  %v349_v56 = vpop.f32.mrf.mxu1 }
 0x21e   :  { %v330_v57 = vadd.f32 %v329_v55, %v266_v53  ;;  %v350_v58 = vadd.f32 %v349_v56, %v267_v54 }
 0x220   :  { %378 = vst [vmem:[#allocation11 + $0x10] sm:$0xff] %v330_v57  ;;  %v380_v61 = vand.u32 2147483647, %v350_v58  ;;  %v379_v12 = vmax.f32 %v350_v58, 0.0 }
 0x222   :  { %v381_v62 = vsub.f32 0.0, %v380_v61  ;;  %v289_v63 = vpop.f32.mrf.mxu2  ;;  %v309_v0 = vpop.f32.mrf.mxu3 }
 0x223   :  { %v290_v1 = vadd.f32 %v289_v63, %v264_v59  ;;  %v310_v2 = vadd.f32 %v309_v0, %v265_v60 }
 0x224   :  { %v382_v3 = vmul.f32 1.442695, %v381_v62 }
 0x225   :  { %365 = vmax.xlane.f32.xlu2 %v310_v2  ;;  %352 = vmax.xlane.f32.xlu1 %v290_v1 }
 0x226   :  { %438 = vpow2.f32 %v382_v3 }
 0x22c   :  { %v439_v4 = vpop.eup %438 }
 0x22d   :  { %v384_v5 = vadd.f32 1.0, %v439_v4  ;;  %v387_v6 = vmul.f32 -0.5, %v439_v4  ;;  %v390_v8 = vand.u32 2147483647, %v439_v4 }
 0x22f   :  { %440 = vlog2.f32 %v384_v5  ;;  %v388_v7 = vadd.f32 1.0, %v387_v6  ;;  %vm391_vm3 = vcmp.lt.f32.partialorder %v390_v8, 0.0004427343 }
 0x231   :  { %v389_v11 = vmul.f32 %v439_v4, %v388_v7 }
 0x235   :  { %v441_v9 = vpop.eup %440 }
 0x236   :  { %v386_v10 = vmul.f32 0.6931472, %v441_v9 }
 0x238   :  { %v392_v13 = vsel %vm391_vm3, %v389_v11, %v386_v10 }
 0x239   :  { %v393_v14 = vadd.f32 %v392_v13, %v379_v12 }
 0x23b   :  { %394 = vst [vmem:[#allocation11 + $0x18] sm:$0xff] %v393_v14 }
 0x298   :  { %v353_v15 = vpop.xlane.xlu1 %352  ;;  %v366_v17 = vpop.xlane.xlu2 %365 }
 0x299   :  { %v354_v16 = vsub.f32 %v290_v1, %v353_v15  ;;  %v367_v19 = vsub.f32 %v310_v2, %v366_v17 }
 0x29b   :  { %v355_v18 = vmul.f32 1.442695, %v354_v16  ;;  %v368_v20 = vmul.f32 1.442695, %v367_v19 }
 0x29d   :  { %442 = vpow2.f32 %v355_v18 }
 0x29e   :  { %444 = vpow2.f32 %v368_v20 }
 0x2a3   :  { %v443_v21 = vpop.eup %442 }
 0x2a4   :  { %357 = vadd.xlane.f32.xlu2 %v443_v21  ;;  %v445_v22 = vpop.eup %444 }
 0x2ac   :  { %370 = vadd.xlane.f32.xlu2 %v445_v22 }
 0x317   :  { %v358_v23 = vpop.xlane.xlu2 %357 }
 0x318   :  { %446 = vrcp.f32 %v358_v23 }
 0x31e   :  { %v447_v24 = vpop.eup %446 }
 0x31f   :  { %v360_v25 = vmul.f32 %v447_v24, %v358_v23  ;;  %v371_v26 = vpop.xlane.xlu2 %370 }
 0x320   :  { %448 = vrcp.f32 %v371_v26 }
 0x321   :  { %v361_v27 = vsub.f32 2.0, %v360_v25 }
 0x323   :  { %v362_v28 = vmul.f32 %v447_v24, %v361_v27 }
 0x325   :  { %v363_v29 = vmul.f32 %v443_v21, %v362_v28 }
 0x326   :  { %v449_v30 = vpop.eup %448 }
 0x327   :  { %364 = vst [vmem:[#allocation11] sm:$0xff] %v363_v29  ;;  %v373_v31 = vmul.f32 %v449_v30, %v371_v26 }
 0x329   :  { %v374_v32 = vsub.f32 2.0, %v373_v31 }
 0x32b   :  { %v375_v33 = vmul.f32 %v449_v30, %v374_v32 }
 0x32d   :  { %v376_v34 = vmul.f32 %v445_v22, %v375_v33 }
 0x32f   :  { %377 = vst [vmem:[#allocation11 + $0x8] sm:$0xff] %v376_v34 }
 0x330   :  { %405 = dma.vmem_to_hbm [thread:$0]  %s401_s23, 512, %s403_s26, [#allocation4]  }
 0x331   :  { %600 = dma.done.wait [#allocation4], 512  }
 0x332   :  { %601 = vsyncadd [#allocation4], 4294966784 }
 0x333   :  { %410 = vsyncpa [#allocation3], 1 }
 0x334   :  { %411 = vsyncpa [#allocation6], 1 }
 0x335   :  { %412 = vsyncpa [#allocation9], 1 }
 0x336   :  { %413 = vsyncpa [#allocation4], 1 }

</bundles_post_ra>
